<compile_context>
chip_gen: v5e
topology: v5e:2x2
jax: 0.10.0
libtpu: 0.0.40
codegen_flags: <defaults>
</compile_context>

<pallas_src>
import functools

import jax
import jax.numpy as jnp
from jax.experimental import pallas as pl
from jax.experimental.pallas import tpu as pltpu


def _round_up(x, m):
    return ((x + m - 1) // m) * m


def _choose_tile_m(m, tile_m):
    # Rows per tile: multiple of 8 (f32 sublanes); cap so the grid has >= 2
    # steps whenever M allows it (engages v7x megacore sharding).
    half = _round_up(max((m + 1) // 2, 1), 8)
    return max(8, min(tile_m, half))


def _regressor_kernel(x_ref, w1_ref, b1_ref, w2_ref, b2_ref, w3_ref, b3_ref,
                      out_ref):
    # x_ref: (tile_m, 1024); w1/w2/w3 bf16 (in, out); b1/b2 f32 (1, out); b3 (1, 2).
    x = x_ref[...].astype(jnp.bfloat16)
    h1 = jnp.dot(x, w1_ref[...], preferred_element_type=jnp.float32) + b1_ref[...]
    h1 = jnp.maximum(h1, 0.0).astype(jnp.bfloat16)            # relu1 (f32 -> bf16 for MXU)
    h2 = jnp.dot(h1, w2_ref[...], preferred_element_type=jnp.float32) + b2_ref[...]
    h2 = jnp.maximum(h2, 0.0).astype(jnp.bfloat16)            # relu2
    h3 = jnp.dot(h2, w3_ref[...], preferred_element_type=jnp.float32)  # (tile_m, 128), cols>=2 are zero
    out_ref[...] = jnp.tanh(h3[:, :2] + b3_ref[...])          # (tile_m, 2) f32


@functools.partial(jax.jit, static_argnames=("tile_m",))
def _regressor_call(x2d, w1, b1, w2, b2, w3p, b3, *, tile_m):
    m = x2d.shape[0]
    grid = (pl.cdiv(m, tile_m),)

    resident = lambda shape: pl.BlockSpec(shape, lambda i: (0, 0))

    return pl.pallas_call(
        _regressor_kernel,
        out_shape=jax.ShapeDtypeStruct((m, 2), jnp.float32),
        grid=grid,
        in_specs=[
            pl.BlockSpec((tile_m, 1024), lambda i: (i, 0)),   # x tile (pipelined over M)
            resident((1024, 512)), resident((1, 512)),        # w1, b1 (resident)
            resident((512, 128)),  resident((1, 128)),        # w2, b2
            resident((128, 128)),  resident((1, 2)),          # w3 (lane-padded), b3
        ],
        out_specs=pl.BlockSpec((tile_m, 2), lambda i: (i, 0)),
        compiler_params=pltpu.CompilerParams(
            dimension_semantics=("parallel",),                # megacore sharding on v7x
            vmem_limit_bytes=32 * 1024 * 1024,
        ),
    )(x2d, w1, b1, w2, b2, w3p, b3)


def prepare_params(params):
    """One-time conversion of raw (f32) params into kernel-ready operands.

    Call once and reuse — keeps per-forward dispatch to a single pallas_call.
    """
    w1, b1, w2, b2, w3, b3 = params
    w1b = jnp.asarray(w1, jnp.bfloat16)                       # (1024, 512)
    w2b = jnp.asarray(w2, jnp.bfloat16)                       # (512, 128)
    w3p = jnp.zeros((128, 128), jnp.bfloat16).at[:, :w3.shape[-1]].set(
        jnp.asarray(w3, jnp.bfloat16))                        # (128, 128), cols>=2 zero
    b1f = jnp.asarray(b1, jnp.float32).reshape(1, -1)         # (1, 512)
    b2f = jnp.asarray(b2, jnp.float32).reshape(1, -1)         # (1, 128)
    b3f = jnp.asarray(b3, jnp.float32).reshape(1, -1)         # (1, 2)
    return (w1b, b1f, w2b, b2f, w3p, b3f)


def tanh_regressor_forward(heatmaps, prepared_params, *, tile_m=512):
    """heatmaps: (B, n_coords, 32, 32) -> (coords (B, n_coords, 2), heatmaps)."""
    B, C, H, W = heatmaps.shape
    assert H * W == 1024, "Regressor expects 32x32 heatmaps (1024 features)"
    M = B * C

    x2d = heatmaps.reshape(M, H * W)
    if x2d.dtype not in (jnp.float32, jnp.bfloat16):
        x2d = x2d.astype(jnp.float32)
    # (If the upstream heatmap producer is under the same jit, feeding bf16
    #  heatmaps here halves the dominant HBM stream; no standalone cast added.)

    tm = _choose_tile_m(M, tile_m)
    coords = _regressor_call(x2d, *prepared_params, tile_m=tm).reshape(B, C, 2)
    return coords, heatmaps


def init_params(key):
    """Deterministic init matching nn.Linear shapes (weights stored (in, out))."""
    def linear(key, fan_in, fan_out):
        kw, kb = jax.random.split(key)
        bound = 1.0 / (fan_in ** 0.5)
        w = jax.random.uniform(kw, (fan_in, fan_out), jnp.float32, -bound, bound)
        b = jax.random.uniform(kb, (1, fan_out), jnp.float32, -bound, bound)
        return w, b

    k1, k2, k3 = jax.random.split(key, 3)
    w1, b1 = linear(k1, 1024, 512)
    w2, b2 = linear(k2, 512, 128)
    w3, b3 = linear(k3, 128, 2)
    return (w1, b1, w2, b2, w3, b3)


if __name__ == "__main__":
    key = jax.random.PRNGKey(0)
    kp, kx = jax.random.split(key)

    B, n_coords = 2, 5                     # small batch; M=10 exercises a partial tile
    heatmaps = jax.random.normal(kx, (B, n_coords, 32, 32), jnp.float32)
    params = init_params(kp)
    prepared = jax.block_until_ready(prepare_params(params))   # one-time weight prep

    coords, hm_out = tanh_regressor_forward(heatmaps, prepared)
    jax.block_until_ready((coords, hm_out))

    # Reference with the same bf16-weight / f32-accumulate recipe.
    w1, b1, w2, b2, w3, b3 = params
    x2d = heatmaps.reshape(B * n_coords, 1024)
    h1 = jnp.maximum(
        jnp.dot(x2d.astype(jnp.bfloat16), w1.astype(jnp.bfloat16),
                preferred_element_type=jnp.float32) + b1, 0.0)
    h2 = jnp.maximum(
        jnp.dot(h1.astype(jnp.bfloat16), w2.astype(jnp.bfloat16),
                preferred_element_type=jnp.float32) + b2, 0.0)
    ref_bf16 = jnp.tanh(
        jnp.dot(h2.astype(jnp.bfloat16), w3.astype(jnp.bfloat16),
                preferred_element_type=jnp.float32) + b3).reshape(B, n_coords, 2)
    # Pure f32 reference (module semantics), loose tolerance for bf16 weights.
    ref_f32 = jnp.tanh(
        jnp.maximum(jnp.maximum(x2d @ w1 + b1, 0.0) @ w2 + b2, 0.0) @ w3 + b3
    ).reshape(B, n_coords, 2)

    assert coords.shape == (B, n_coords, 2)
    assert hm_out.shape == heatmaps.shape
    assert jnp.all(jnp.isfinite(coords)), "non-finite coords"
    assert jnp.allclose(coords, ref_bf16, atol=5e-3), "mismatch vs bf16 reference"
    assert jnp.allclose(coords, ref_f32, atol=3e-2), "mismatch vs f32 reference"

    print("KERNEL_OK")
</pallas_src>

<mosaic_0001>
module attributes {stable_mosaic.version = 11 : i64} {
  func.func @_regressor_kernel(%arg0: i32, %arg1: memref<8x1024xf32, #tpu.memory_space<vmem>>, %arg2: memref<1024x512xbf16, #tpu.memory_space<vmem>>, %arg3: memref<1x512xf32, #tpu.memory_space<vmem>>, %arg4: memref<512x128xbf16, #tpu.memory_space<vmem>>, %arg5: memref<1x128xf32, #tpu.memory_space<vmem>>, %arg6: memref<128x128xbf16, #tpu.memory_space<vmem>>, %arg7: memref<1x2xf32, #tpu.memory_space<vmem>>, %arg8: memref<8x2xf32, #tpu.memory_space<vmem>>) attributes {dimension_semantics = [#tpu.dimension_semantics<parallel>], iteration_bounds = array<i64: 2>, scalar_prefetch = 0 : i64, scratch_operands = 0 : i64, tpu.core_type = #tpu.core_type<tc>, window_params = [{transform_indices = @transform_0, window_bounds = array<i64: 8, 1024>}, {pipeline_mode = #tpu.pipeline_mode<synchronous>, transform_indices = @transform_1, window_bounds = array<i64: 1024, 512>}, {pipeline_mode = #tpu.pipeline_mode<synchronous>, transform_indices = @transform_2, window_bounds = array<i64: 1, 512>}, {pipeline_mode = #tpu.pipeline_mode<synchronous>, transform_indices = @transform_3, window_bounds = array<i64: 512, 128>}, {pipeline_mode = #tpu.pipeline_mode<synchronous>, transform_indices = @transform_4, window_bounds = array<i64: 1, 128>}, {pipeline_mode = #tpu.pipeline_mode<synchronous>, transform_indices = @transform_5, window_bounds = array<i64: 128, 128>}, {pipeline_mode = #tpu.pipeline_mode<synchronous>, transform_indices = @transform_6, window_bounds = array<i64: 1, 2>}, {transform_indices = @transform_7, window_bounds = array<i64: 8, 2>}]} {
    %c0 = arith.constant 0 : index
    %c0_0 = arith.constant 0 : index
    %0 = vector.load %arg1[%c0, %c0_0] : memref<8x1024xf32, #tpu.memory_space<vmem>>, vector<8x1024xf32>
    %1 = arith.truncf %0 : vector<8x1024xf32> to vector<8x1024xbf16>
    %c0_1 = arith.constant 0 : index
    %c0_2 = arith.constant 0 : index
    %2 = vector.load %arg2[%c0_1, %c0_2] : memref<1024x512xbf16, #tpu.memory_space<vmem>>, vector<1024x512xbf16>
    %cst = arith.constant dense<0.000000e+00> : vector<8x512xf32>
    %3 = tpu.matmul %1, %2, %cst {dimension_numbers = #tpu.dot_dimension_numbers<[1], [0], [0], [1], [0, 0, 1, 1], [], []>} : vector<8x1024xbf16>, vector<1024x512xbf16>, vector<8x512xf32> -> vector<8x512xf32>
    %c0_3 = arith.constant 0 : index
    %c0_4 = arith.constant 0 : index
    %4 = vector.load %arg3[%c0_3, %c0_4] : memref<1x512xf32, #tpu.memory_space<vmem>>, vector<1x512xf32>
    %5 = vector.broadcast %4 : vector<1x512xf32> to vector<8x512xf32>
    %6 = arith.addf %3, %5 : vector<8x512xf32>
    %cst_5 = arith.constant 0.000000e+00 : f32
    %7 = vector.broadcast %cst_5 : f32 to vector<8x512xf32>
    %8 = arith.maximumf %6, %7 : vector<8x512xf32>
    %9 = arith.truncf %8 : vector<8x512xf32> to vector<8x512xbf16>
    %c0_6 = arith.constant 0 : index
    %c0_7 = arith.constant 0 : index
    %10 = vector.load %arg4[%c0_6, %c0_7] : memref<512x128xbf16, #tpu.memory_space<vmem>>, vector<512x128xbf16>
    %cst_8 = arith.constant dense<0.000000e+00> : vector<8x128xf32>
    %11 = tpu.matmul %9, %10, %cst_8 {dimension_numbers = #tpu.dot_dimension_numbers<[1], [0], [0], [1], [0, 0, 1, 1], [], []>} : vector<8x512xbf16>, vector<512x128xbf16>, vector<8x128xf32> -> vector<8x128xf32>
    %c0_9 = arith.constant 0 : index
    %c0_10 = arith.constant 0 : index
    %12 = vector.load %arg5[%c0_9, %c0_10] : memref<1x128xf32, #tpu.memory_space<vmem>>, vector<1x128xf32>
    %13 = vector.broadcast %12 : vector<1x128xf32> to vector<8x128xf32>
    %14 = arith.addf %11, %13 : vector<8x128xf32>
    %cst_11 = arith.constant 0.000000e+00 : f32
    %15 = vector.broadcast %cst_11 : f32 to vector<8x128xf32>
    %16 = arith.maximumf %14, %15 : vector<8x128xf32>
    %17 = arith.truncf %16 : vector<8x128xf32> to vector<8x128xbf16>
    %c0_12 = arith.constant 0 : index
    %c0_13 = arith.constant 0 : index
    %18 = vector.load %arg6[%c0_12, %c0_13] : memref<128x128xbf16, #tpu.memory_space<vmem>>, vector<128x128xbf16>
    %cst_14 = arith.constant dense<0.000000e+00> : vector<8x128xf32>
    %19 = tpu.matmul %17, %18, %cst_14 {dimension_numbers = #tpu.dot_dimension_numbers<[1], [0], [0], [1], [0, 0, 1, 1], [], []>} : vector<8x128xbf16>, vector<128x128xbf16>, vector<8x128xf32> -> vector<8x128xf32>
    %20 = vector.extract_strided_slice %19 {offsets = [0, 0], sizes = [8, 2], strides = [1, 1]} : vector<8x128xf32> to vector<8x2xf32>
    %c0_15 = arith.constant 0 : index
    %c0_16 = arith.constant 0 : index
    %21 = vector.load %arg7[%c0_15, %c0_16] : memref<1x2xf32, #tpu.memory_space<vmem>>, vector<1x2xf32>
    %22 = vector.broadcast %21 : vector<1x2xf32> to vector<8x2xf32>
    %23 = arith.addf %20, %22 : vector<8x2xf32>
    %24 = math.tanh %23 : vector<8x2xf32>
    %c0_17 = arith.constant 0 : index
    %c0_18 = arith.constant 0 : index
    %25 = vector.load %arg8[%c0_17, %c0_18] : memref<8x2xf32, #tpu.memory_space<vmem>>, vector<8x2xf32>
    tpu.vector_store %arg8[%c0_17, %c0_18], %24 {strides = array<i32>} : memref<8x2xf32, #tpu.memory_space<vmem>>, vector<8x2xf32>,
    return
  }
  func.func @transform_0(%arg0: i32) -> (i32, i32) {
    %c0_i32 = arith.constant 0 : i32
    %c0_i32_0 = arith.constant 0 : i32
    return %arg0, %c0_i32 : i32, i32
  }
  func.func @transform_1(%arg0: i32) -> (i32, i32) {
    %c0_i32 = arith.constant 0 : i32
    %c0_i32_0 = arith.constant 0 : i32
    %c0_i32_1 = arith.constant 0 : i32
    return %c0_i32, %c0_i32_0 : i32, i32
  }
  func.func @transform_2(%arg0: i32) -> (i32, i32) {
    %c0_i32 = arith.constant 0 : i32
    %c0_i32_0 = arith.constant 0 : i32
    %c0_i32_1 = arith.constant 0 : i32
    return %c0_i32, %c0_i32_0 : i32, i32
  }
  func.func @transform_3(%arg0: i32) -> (i32, i32) {
    %c0_i32 = arith.constant 0 : i32
    %c0_i32_0 = arith.constant 0 : i32
    %c0_i32_1 = arith.constant 0 : i32
    return %c0_i32, %c0_i32_0 : i32, i32
  }
  func.func @transform_4(%arg0: i32) -> (i32, i32) {
    %c0_i32 = arith.constant 0 : i32
    %c0_i32_0 = arith.constant 0 : i32
    %c0_i32_1 = arith.constant 0 : i32
    return %c0_i32, %c0_i32_0 : i32, i32
  }
  func.func @transform_5(%arg0: i32) -> (i32, i32) {
    %c0_i32 = arith.constant 0 : i32
    %c0_i32_0 = arith.constant 0 : i32
    %c0_i32_1 = arith.constant 0 : i32
    return %c0_i32, %c0_i32_0 : i32, i32
  }
  func.func @transform_6(%arg0: i32) -> (i32, i32) {
    %c0_i32 = arith.constant 0 : i32
    %c0_i32_0 = arith.constant 0 : i32
    %c0_i32_1 = arith.constant 0 : i32
    return %c0_i32, %c0_i32_0 : i32, i32
  }
  func.func @transform_7(%arg0: i32) -> (i32, i32) {
    %c0_i32 = arith.constant 0 : i32
    %c0_i32_0 = arith.constant 0 : i32
    return %arg0, %c0_i32 : i32, i32
  }
}

</mosaic_0001>

<bundles_post_ra>
// kernel: _regressor_call.1
= control target key start
LH: loop header
LB: loop body
LE: loop exit
PB: predicated region body
PF: predicated region fallthrough
CT: control target
= control target key end

     0   :  { %12 = vsyncpa [#allocation3], 0  ;;  %s4898_s0 = inlined_call_operand.hbm [shape: f32[10,1024], index: 0, kind: input, shape index: {}]   ;;  %s4899_s1 = inlined_call_operand.hbm [shape: bf16[1024,512], index: 1, kind: input, shape index: {}]   ;;  %s4900_s2 = inlined_call_operand.hbm [shape: f32[1,512], index: 2, kind: input, shape index: {}]   ;;  %s4901_s3 = inlined_call_operand.hbm [shape: bf16[512,128], index: 3, kind: input, shape index: {}]   ;;  %s4902_s4 = inlined_call_operand.vmem [shape: f32[1,128], index: 4, kind: input, shape index: {}]   ;;  %s4903_s5 = inlined_call_operand.hbm [shape: bf16[128,128], index: 5, kind: input, shape index: {}]   ;;  %s4904_s6 = inlined_call_operand.vmem [shape: f32[1,2], index: 6, kind: input, shape index: {}]   ;;  %s4905_s7 = inlined_call_operand.vmem [shape: f32[10,2], index: 7, kind: output, shape index: {}]  }
   0x1   :  { %14 = vsyncpa [#allocation3 + $0x1], 0 }
   0x2   :  { %15 = vsyncpa [#allocation5], 0 }
   0x3   :  { %16 = vsyncpa [#allocation8], 0  ;;  %s4679_s24 = smov 0   ;;  %s4681_s25 = smov 0  }
   0x4   :  { %s4683_s26 = smov 0   ;;  %s4685_s27 = smov 0  }
   0x5 LB: > { %s216_s30 = sshll.u32 %s4899_s1, 4  ;;  %s4703_s8 = sadd.s32 4294967295, %s4629_s27   ;;  %s4629_s27 = sphi %s4685_s27, %s4913_s27   ;;  %s4625_s26 = sphi %s4683_s26, %s4912_s26   ;;  %s4621_s25 = sphi %s4681_s25, %s4911_s25   ;;  %s4617_s24 = sphi %s4679_s24, %s4910_s24   ;;  %s217_s30 = int_to_ptr.hbm [resolvable:$true] %s216_s30 }
   0x6   : > { %p2850_p0 = scmp.ge.s32.totalorder %s4629_s27, 1  ;;  %p43_p1 = scmp.eq.s32.totalorder %s4703_s8, 0 }
   0x7   : > { %p205_p2 = scmp.lt.s32.totalorder %s4629_s27, 3  ;;  %s4631_s10 = smov [#allocation4]  }
   0x8   : > { %s218_s11 = sshll.u32 %s4631_s10, 4  ;;  %s242_s14 = sshll.u32 %s4901_s3, 4  ;;  %s219_s11 = int_to_ptr.vmem [resolvable:$true] %s218_s11  ;;  %s243_s14 = int_to_ptr.hbm [resolvable:$true] %s242_s14 }
   0x9   : > { %p4708_p3 = pnand %p2850_p0, %p205_p2  ;;  %s4632_s16 = smov [#allocation7]  }
   0xa   : > { %s244_s17 = sshll.u32 %s4632_s16, 4  ;;  %s4633_s18 = smov 256   ;;  %s245_s17 = int_to_ptr.vmem [resolvable:$true] %s244_s17 }
   0xb   : > { %p4367_p4 = pneg %p4708_p3  ;;  %s4634_s19 = smov 16  }
   0xc   : > { %s4635_s20 = smov 64   ;;  %s4636_s21 = smov 4  }
   0xd   : > { %p4719_p5 = pnand %p4367_p4, %p43_p1  ;;  %s231_s28 = sshll.u32 %s4900_s2, 4  ;;  %s232_s28 = int_to_ptr.hbm [resolvable:$true] %s231_s28 }
   0xe   : > { %s4637_s29 = smov [#allocation6]   ;;  %s259_s12 = sshll.u32 %s4903_s5, 4  ;;  %s260_s12 = int_to_ptr.hbm [resolvable:$true] %s259_s12 }
   0xf   : > { %4370 = dma.hbm_to_vmem [thread:$0]  (!%p4719_p5), %s217_s30, 32768, %s219_s11, [#allocation5], %s4633_s18, %s4633_s18, %s4634_s19  }
  0x10   : > { %4376 = dma.hbm_to_vmem [thread:$0]  (!%p4719_p5), %s243_s14, 4096, %s245_s17, [#allocation8], %s4635_s20, %s4635_s20, %s4636_s21  }
  0x11   : > { %s233_s30 = sshll.u32 %s4637_s29, 4  ;;  %s4638_s13 = smov [#allocation9]   ;;  %s234_s30 = int_to_ptr.vmem [resolvable:$true] %s233_s30 }
  0x12   : > { %4373 = dma.hbm_to_vmem [thread:$0]  (!%p4719_p5), %s232_s28, 64, %s234_s30, [#allocation5]  }
  0x13   : > { %s261_s14 = sshll.u32 %s4638_s13, 4  ;;  %s4738_s16 = sadd.s32 1, %s4629_s27   ;;  %s262_s14 = int_to_ptr.vmem [resolvable:$true] %s261_s14 }
  0x14   : > { %4379 = dma.hbm_to_vmem [thread:$0]  (!%p4719_p5), %s260_s12, 1024, %s262_s14, [#allocation8], %s4635_s20, %s4635_s20, %s4636_s21  }
  0x15   : > { %s26_s17 = ssub.s32 %s4629_s27, %s4738_s16  ;;  %s29_s18 = sadd.s32 1, %s4625_s26 }
  0x16   : > { %p27_p6 = scmp.eq.s32.totalorder %s26_s17, 0  ;;  %p36_p7 = scmp.ne.s32.totalorder %s4625_s26, %s4621_s25 }
  0x17   : > { %p37_p8 = scmp.eq.s32.totalorder %s4629_s27, 0  ;;  %p42_p9 = scmp.ne.s32.totalorder %s4621_s25, %s4617_s24 }
  0x18   : > { %s4749_s19 = scalar_select %p27_p6, %s4625_s26, %s29_s18  }
  0x19   : > { %p4753_p10 = por %p43_p1, %p42_p9  ;;  %p4388_p11 = scmp.lt.s32.totalorder %s4629_s27, 2 }
  0x1a   : > { %s278_s23 = sand.u32 1, %s4625_s26   ;;  %s4052_s15 = sshll.u32 %s4629_s27, 6 }
  0x1b   : > { %p38_p12 = por %p37_p8, %p36_p7  ;;  %s2856_s20 = sshll.u32 %s278_s23, 6 }
  0x1c   : > { %s287_s29 = scalar_lea.hbm %s4898_s0, %s4052_s15  ;;  %s282_s10 = scalar_lea.vmem [#allocation2], %s2856_s20 }
  0x1d   : > { %s289_s30 = sshll.u32 %s287_s29, 4  ;;  %s291_s11 = sshll.u32 %s282_s10, 4  ;;  %s290_s30 = int_to_ptr.hbm [resolvable:$true] %s289_s30  ;;  %s292_s11 = int_to_ptr.vmem [resolvable:$true] %s291_s11 }
  0x1e   : > { %p4763_p13 = pnand %p4388_p11, %p38_p12  ;;  %s279_s12 = scalar_lea.sflag [#allocation3], %s278_s23 }
  0x1f   : > { %s4557_s13 = sshra.s32 %s290_s30, 4  ;;  %s4564_s18 = scalar_lea.hbm %s4898_s0, 128  ;;  %s4558_s13 = int_to_ptr.hbm [resolvable:$true] %s4557_s13 }
  0x20   : > { %s4559_s27 = scalar_lea.hbm %s4558_s13, 64  ;;  %p4561_p2 = pneg %p4763_p13 }
  0x21   : > { %p4560_p0 = scmp.ne.s32.totalorder %s4558_s13, %s4559_s27  ;;  %p4565_p6 = scmp.lt.s32.totalorder %s4558_s13, %s4898_s0 }
  0x22   : > { %p4566_p7 = scmp.lt.s32.totalorder %s4564_s18, %s4559_s27 }
  0x23   : > { %p4562_p4 = pnand %p4561_p2, %p4560_p0 }
  0x24   : > { %p4567_p8 = por %p4566_p7, %p4565_p6 }
  0x25   : > { %p4563_p5 = pneg %p4562_p4 }
  0x27   : > { %p4568_p9 = pnand %p4567_p8, %p4563_p5 }
  0x29   : > { %4571 = shalt.err (!%p4568_p9)
}
  0x2a   : > { %4383 = dma.hbm_to_vmem [thread:$0]  (!%p4763_p13), %s290_s30, 1024, %s292_s11, %s279_s12  }
  0x2b   : > { %300 = sbr.rel (%p4708_p3) target bundleno = 729 (0x2d9), region = 48  ;;  %s302_s23 = sand.u32 (!%p4708_p3), 1, %s4621_s25  }
  0x2c   : > { %s2860_s21 = sshll.u32 (!%p4708_p3), %s302_s23, 6  ;;  %s303_s28 = scalar_lea.sflag (!%p4708_p3), [#allocation3], %s302_s23 }
  0x2d   : > { %s4780_s29 = scalar_lea.vmem (!%p4708_p3), [#allocation2], %s2860_s21 }
  0x30   : > { %4604 = dma.done.wait (%p4753_p10), %s303_s28, 1024  }
  0x31   : > { %4606 = vsyncadd (%p4753_p10), %s303_s28, 4294966272 }
  0x32   : > { %4608 = dma.done.wait (%p43_p1), [#allocation5], 32832  }
  0x33   : > { %4610 = vsyncadd (%p43_p1), [#allocation5], 4294934464 }
  0x34   : > { %4612 = dma.done.wait (%p43_p1), [#allocation8], 5120  }
  0x35   : > { %4614 = vsyncadd (%p43_p1), [#allocation8], 4294962176  ;;  %v2980_v0 = vld [vmem:[#allocation4 + $0xe0] sm:$0xf]  ;;  %v4083_v1 = vld [vmem:[#allocation4 + $0xec] sm:$0xf0] }
  0x36   : > { %v3108_v2 = vld [vmem:[#allocation4 + $0x1e0] sm:$0xf]  ;;  %v2981_v3 = vor.u32 %v4083_v1, %v2980_v0  ;;  %v4115_v4 = vld [vmem:[#allocation4 + $0x1ec] sm:$0xf0]  ;;  %p357_p1 = scmp.lt.s32.totalorder %s4703_s8, 1  ;;  %vm2744_vm0 = vcmask 15360  }
  0x37   : > { %v3236_v5 = vld [vmem:[#allocation4 + $0x2e0] sm:$0xf]  ;;  %v4147_v6 = vld [vmem:[#allocation4 + $0x2ec] sm:$0xf0]  ;;  %v3109_v7 = vor.u32 %v4115_v4, %v3108_v2 }
  0x38   : > { %v3237_v8 = vor.u32 %v4147_v6, %v3236_v5  ;;  %v3364_v9 = vld [vmem:[#allocation4 + $0x3e0] sm:$0xf]  ;;  %v4179_v10 = vld [vmem:[#allocation4 + $0x3ec] sm:$0xf0]  ;;  %1923 = vmatpush.bf16.msra.mxu0 %v2981_v3  ;;  %s4915_s8 = smov (!%p357_p1, %s4703_s8), 1 }
  0x39   : > { %v2964_v11 = vld [vmem:[#allocation4 + $0xc0] sm:$0xf]  ;;  %v3365_v12 = vor.u32 %v4179_v10, %v3364_v9  ;;  %v4079_v13 = vld [vmem:[#allocation4 + $0xcc] sm:$0xf0]  ;;  %1936 = vmatpush.bf16.msra.mxu1 %v3109_v7  ;;  %s2865_s11 = sshll.u32 %s4915_s8, 3 }
  0x3a   : > { %v3092_v14 = vld [vmem:[#allocation4 + $0x1c0] sm:$0xf]  ;;  %v4111_v15 = vld [vmem:[#allocation4 + $0x1cc] sm:$0xf0]  ;;  %1949 = vmatpush.bf16.msra.mxu2 %v3237_v8  ;;  %v2965_v16 = vor.u32 %v4079_v13, %v2964_v11  ;;  %s360_s13 = scalar_lea.vmem %s4905_s7, %s2865_s11 }
  0x3b   : > { %v3093_v17 = vor.u32 %v4111_v15, %v3092_v14  ;;  %v3220_v18 = vld [vmem:[#allocation4 + $0x2c0] sm:$0xf]  ;;  %v4143_v19 = vld [vmem:[#allocation4 + $0x2cc] sm:$0xf0]  ;;  %1962 = vmatpush.bf16.msra.mxu3 %v3365_v12 }
  0x3c   : > { %v3348_v20 = vld [vmem:[#allocation4 + $0x3c0] sm:$0xf]  ;;  %v3221_v21 = vor.u32 %v4143_v19, %v3220_v18  ;;  %v4175_v22 = vld [vmem:[#allocation4 + $0x3cc] sm:$0xf0]  ;;  %1924 = vmatpush.bf16.msra.mxu0 %v2965_v16 }
  0x3d   : > { %v2948_v23 = vld [vmem:[#allocation4 + $0xa0] sm:$0xf]  ;;  %v4075_v24 = vld [vmem:[#allocation4 + $0xac] sm:$0xf0]  ;;  %v3349_v25 = vor.u32 %v4175_v22, %v3348_v20  ;;  %1937 = vmatpush.bf16.msra.mxu1 %v3093_v17 }
  0x3e   : > { %v3076_v26 = vld [vmem:[#allocation4 + $0x1a0] sm:$0xf]  ;;  %v4107_v27 = vld [vmem:[#allocation4 + $0x1ac] sm:$0xf0]  ;;  %v2949_v29 = vor.u32 %v4075_v24, %v2948_v23  ;;  %1950 = vmatpush.bf16.msra.mxu2 %v3221_v21 }
  0x3f   : > { %v3204_v28 = vld [vmem:[#allocation4 + $0x2a0] sm:$0xf]  ;;  %v4139_v30 = vld [vmem:[#allocation4 + $0x2ac] sm:$0xf0]  ;;  %v3077_v33 = vor.u32 %v4107_v27, %v3076_v26  ;;  %1963 = vmatpush.bf16.msra.mxu3 %v3349_v25 }
  0x40   : > { %v3332_v31 = vld [vmem:[#allocation4 + $0x3a0] sm:$0xf]  ;;  %v4171_v32 = vld [vmem:[#allocation4 + $0x3ac] sm:$0xf0]  ;;  %v3205_v34 = vor.u32 %v4139_v30, %v3204_v28  ;;  %1925 = vmatpush.bf16.msra.mxu0 %v2949_v29 }
  0x41   : > { %v2932_v35 = vld [vmem:[#allocation4 + $0x80] sm:$0xf]  ;;  %v4071_v36 = vld [vmem:[#allocation4 + $0x8c] sm:$0xf0]  ;;  %v3333_v38 = vor.u32 %v4171_v32, %v3332_v31  ;;  %1938 = vmatpush.bf16.msra.mxu1 %v3077_v33 }
  0x42   : > { %v3060_v37 = vld [vmem:[#allocation4 + $0x180] sm:$0xf]  ;;  %v4103_v39 = vld [vmem:[#allocation4 + $0x18c] sm:$0xf0]  ;;  %v2933_v44 = vor.u32 %v4071_v36, %v2932_v35  ;;  %1951 = vmatpush.bf16.msra.mxu2 %v3205_v34 }
  0x43   : > { %v3188_v40 = vld [vmem:[#allocation4 + $0x280] sm:$0xf]  ;;  %v4135_v41 = vld [vmem:[#allocation4 + $0x28c] sm:$0xf0]  ;;  %v3061_v45 = vor.u32 %v4103_v39, %v3060_v37  ;;  %1964 = vmatpush.bf16.msra.mxu3 %v3333_v38 }
  0x44   : > { %v3316_v42 = vld [vmem:[#allocation4 + $0x380] sm:$0xf]  ;;  %v4167_v43 = vld [vmem:[#allocation4 + $0x38c] sm:$0xf0]  ;;  %v3189_v46 = vor.u32 %v4135_v41, %v3188_v40  ;;  %1926 = vmatpush.bf16.msra.mxu0 %v2933_v44 }
  0x45   : > { %v2916_v47 = vld [vmem:[#allocation4 + $0x60] sm:$0xf]  ;;  %v4067_v48 = vld [vmem:[#allocation4 + $0x6c] sm:$0xf0]  ;;  %v3317_v50 = vor.u32 %v4167_v43, %v3316_v42  ;;  %1939 = vmatpush.bf16.msra.mxu1 %v3061_v45 }
  0x46   : > { %v3044_v49 = vld [vmem:[#allocation4 + $0x160] sm:$0xf]  ;;  %v4099_v51 = vld [vmem:[#allocation4 + $0x16c] sm:$0xf0]  ;;  %v2917_v56 = vor.u32 %v4067_v48, %v2916_v47  ;;  %1952 = vmatpush.bf16.msra.mxu2 %v3189_v46 }
  0x47   : > { %v3172_v52 = vld [vmem:[#allocation4 + $0x260] sm:$0xf]  ;;  %v4131_v53 = vld [vmem:[#allocation4 + $0x26c] sm:$0xf0]  ;;  %v3045_v57 = vor.u32 %v4099_v51, %v3044_v49  ;;  %1965 = vmatpush.bf16.msra.mxu3 %v3317_v50 }
  0x48   : > { %v3300_v54 = vld [vmem:[#allocation4 + $0x360] sm:$0xf]  ;;  %v4163_v55 = vld [vmem:[#allocation4 + $0x36c] sm:$0xf0]  ;;  %v3173_v58 = vor.u32 %v4131_v53, %v3172_v52  ;;  %1927 = vmatpush.bf16.msra.mxu0 %v2917_v56 }
  0x49   : > { %v2900_v59 = vld [vmem:[#allocation4 + $0x40] sm:$0xf]  ;;  %v4063_v60 = vld [vmem:[#allocation4 + $0x4c] sm:$0xf0]  ;;  %v3301_v62 = vor.u32 %v4163_v55, %v3300_v54  ;;  %1940 = vmatpush.bf16.msra.mxu1 %v3045_v57 }
  0x4a   : > { %v3028_v61 = vld [vmem:[#allocation4 + $0x140] sm:$0xf]  ;;  %v4095_v63 = vld [vmem:[#allocation4 + $0x14c] sm:$0xf0]  ;;  %v2901_v4 = vor.u32 %v4063_v60, %v2900_v59  ;;  %1953 = vmatpush.bf16.msra.mxu2 %v3173_v58 }
  0x4b   : > { %v3156_v0 = vld [vmem:[#allocation4 + $0x240] sm:$0xf]  ;;  %v4127_v1 = vld [vmem:[#allocation4 + $0x24c] sm:$0xf0]  ;;  %v3029_v5 = vor.u32 %v4095_v63, %v3028_v61  ;;  %1966 = vmatpush.bf16.msra.mxu3 %v3301_v62 }
  0x4c   : > { %v3284_v2 = vld [vmem:[#allocation4 + $0x340] sm:$0xf]  ;;  %v4159_v3 = vld [vmem:[#allocation4 + $0x34c] sm:$0xf0]  ;;  %v3157_v6 = vor.u32 %v4127_v1, %v3156_v0  ;;  %1928 = vmatpush.bf16.msra.mxu0 %v2901_v4 }
  0x4d   : > { %v2884_v7 = vld [vmem:[#allocation4 + $0x20] sm:$0xf]  ;;  %v4059_v8 = vld [vmem:[#allocation4 + $0x2c] sm:$0xf0]  ;;  %v3285_v10 = vor.u32 %v4159_v3, %v3284_v2  ;;  %1941 = vmatpush.bf16.msra.mxu1 %v3029_v5 }
  0x4e   : > { %v3012_v9 = vld [vmem:[#allocation4 + $0x120] sm:$0xf]  ;;  %v4091_v11 = vld [vmem:[#allocation4 + $0x12c] sm:$0xf0]  ;;  %v2885_v16 = vor.u32 %v4059_v8, %v2884_v7  ;;  %1954 = vmatpush.bf16.msra.mxu2 %v3157_v6 }
  0x4f   : > { %v3140_v12 = vld [vmem:[#allocation4 + $0x220] sm:$0xf]  ;;  %v4123_v13 = vld [vmem:[#allocation4 + $0x22c] sm:$0xf0]  ;;  %v3013_v19 = vor.u32 %v4091_v11, %v3012_v9  ;;  %1967 = vmatpush.bf16.msra.mxu3 %v3285_v10  ;;  %v364_v10 = vld [vmem:[%s4780_s29 + $0x18] sm:$0xff] }
  0x50   : > { %v3268_v14 = vld [vmem:[#allocation4 + $0x320] sm:$0xf]  ;;  %v4155_v15 = vld [vmem:[#allocation4 + $0x32c] sm:$0xf0]  ;;  %v3141_v20 = vor.u32 %v4123_v13, %v3140_v12  ;;  %1929 = vmatpush.bf16.msra.mxu0 %v2885_v16 }
  0x51   : > { %v2868_v17 = vld [vmem:[#allocation4] sm:$0xf]  ;;  %v4055_v18 = vld [vmem:[#allocation4 + $0xc] sm:$0xf0]  ;;  %v3269_v24 = vor.u32 %v4155_v15, %v3268_v14  ;;  %1942 = vmatpush.bf16.msra.mxu1 %v3013_v19  ;;  %v4801_v15 = vpack.c.bf16 %v364_v10, %v364_v10  ;;  %v362_v19 = vld [vmem:[%s4780_s29 + $0x8] sm:$0xff] }
  0x52   : > { %v2996_v21 = vld [vmem:[#allocation4 + $0x100] sm:$0xf]  ;;  %v4087_v22 = vld [vmem:[#allocation4 + $0x10c] sm:$0xf0]  ;;  %v2869_v31 = vor.u32 %v4055_v18, %v2868_v17  ;;  %1955 = vmatpush.bf16.msra.mxu2 %v3141_v20  ;;  %v3110_v10 = vld [vmem:[#allocation4 + $0x1f0] sm:$0xf0] }
  0x53   : > { %v3124_v23 = vld [vmem:[#allocation4 + $0x200] sm:$0xf]  ;;  %v4119_v25 = vld [vmem:[#allocation4 + $0x20c] sm:$0xf0]  ;;  %v2997_v35 = vor.u32 %v4087_v22, %v2996_v21  ;;  %1968 = vmatpush.bf16.msra.mxu3 %v3269_v24 }
  0x54   : > { %v3252_v26 = vld [vmem:[#allocation4 + $0x300] sm:$0xf]  ;;  %v4151_v27 = vld [vmem:[#allocation4 + $0x30c] sm:$0xf0]  ;;  %v3125_v36 = vor.u32 %v4119_v25, %v3124_v23  ;;  %1930 = vmatpush.bf16.msra.mxu0 %v2869_v31  ;;  %v4807_v25 = vpack.c.bf16 %v362_v19, %v362_v19 }
  0x55   : > { %v3492_v28 = vld [vmem:[#allocation4 + $0x4e0] sm:$0xf]  ;;  %v4211_v29 = vld [vmem:[#allocation4 + $0x4ec] sm:$0xf0]  ;;  %v3253_v39 = vor.u32 %v4151_v27, %v3252_v26  ;;  %1943 = vmatpush.bf16.msra.mxu1 %v2997_v35 }
  0x56   : > { %v3620_v30 = vld [vmem:[#allocation4 + $0x5e0] sm:$0xf]  ;;  %v4243_v32 = vld [vmem:[#allocation4 + $0x5ec] sm:$0xf0]  ;;  %v3493_v40 = vor.u32 %v4211_v29, %v3492_v28  ;;  %1956 = vmatpush.bf16.msra.mxu2 %v3125_v36 }
  0x57   : > { %v3748_v33 = vld [vmem:[#allocation4 + $0x6e0] sm:$0xf]  ;;  %v4275_v34 = vld [vmem:[#allocation4 + $0x6ec] sm:$0xf0]  ;;  %v3621_v41 = vor.u32 %v4243_v32, %v3620_v30  ;;  %1969 = vmatpush.bf16.msra.mxu3 %v3253_v39 }
  0x58   : > { %v3876_v37 = vld [vmem:[#allocation4 + $0x7e0] sm:$0xf]  ;;  %v4307_v38 = vld [vmem:[#allocation4 + $0x7ec] sm:$0xf0]  ;;  %v3749_v42 = vor.u32 %v4275_v34, %v3748_v33  ;;  %1975 = vmatpush.bf16.msrb.mxu0 %v3493_v40  ;;  %1944 = vmatmul.bf16.vlgmr.msra.gmra.mxu1 %v4807_v25 }
  0x59   : > { %v3476_v43 = vld [vmem:[#allocation4 + $0x4c0] sm:$0xf]  ;;  %v4207_v44 = vld [vmem:[#allocation4 + $0x4cc] sm:$0xf0]  ;;  %v3877_v46 = vor.u32 %v4307_v38, %v3876_v37  ;;  %1988 = vmatpush.bf16.msrb.mxu1 %v3621_v41 }
  0x5a   : > { %v3604_v45 = vld [vmem:[#allocation4 + $0x5c0] sm:$0xf]  ;;  %v4239_v47 = vld [vmem:[#allocation4 + $0x5cc] sm:$0xf0]  ;;  %v3477_v52 = vor.u32 %v4207_v44, %v3476_v43  ;;  %2001 = vmatpush.bf16.msrb.mxu2 %v3749_v42  ;;  %1970 = vmatmul.bf16.vlgmr.msra.gmra.mxu3 %v4801_v15 }
  0x5b   : > { %v3732_v48 = vld [vmem:[#allocation4 + $0x6c0] sm:$0xf]  ;;  %v4271_v49 = vld [vmem:[#allocation4 + $0x6cc] sm:$0xf0]  ;;  %v3605_v54 = vor.u32 %v4239_v47, %v3604_v45  ;;  %2014 = vmatpush.bf16.msrb.mxu3 %v3877_v46 }
  0x5c   : > { %v3860_v50 = vld [vmem:[#allocation4 + $0x7c0] sm:$0xf]  ;;  %v4303_v51 = vld [vmem:[#allocation4 + $0x7cc] sm:$0xf0]  ;;  %v3733_v55 = vor.u32 %v4271_v49, %v3732_v48  ;;  %1976 = vmatpush.bf16.msrb.mxu0 %v3477_v52 }
  0x5d   : > { %v3460_v53 = vld [vmem:[#allocation4 + $0x4a0] sm:$0xf]  ;;  %v4203_v56 = vld [vmem:[#allocation4 + $0x4ac] sm:$0xf0]  ;;  %v3861_v59 = vor.u32 %v4303_v51, %v3860_v50  ;;  %1989 = vmatpush.bf16.msrb.mxu1 %v3605_v54 }
  0x5e   : > { %v3588_v57 = vld [vmem:[#allocation4 + $0x5a0] sm:$0xf]  ;;  %v4235_v58 = vld [vmem:[#allocation4 + $0x5ac] sm:$0xf0]  ;;  %v3461_v0 = vor.u32 %v4203_v56, %v3460_v53  ;;  %2002 = vmatpush.bf16.msrb.mxu2 %v3733_v55 }
  0x5f   : > { %v3716_v60 = vld [vmem:[#allocation4 + $0x6a0] sm:$0xf]  ;;  %v4267_v61 = vld [vmem:[#allocation4 + $0x6ac] sm:$0xf0]  ;;  %v3589_v1 = vor.u32 %v4235_v58, %v3588_v57  ;;  %2015 = vmatpush.bf16.msrb.mxu3 %v3861_v59 }
  0x60   : > { %v3844_v62 = vld [vmem:[#allocation4 + $0x7a0] sm:$0xf]  ;;  %v4299_v63 = vld [vmem:[#allocation4 + $0x7ac] sm:$0xf0]  ;;  %v3717_v5 = vor.u32 %v4267_v61, %v3716_v60  ;;  %1977 = vmatpush.bf16.msrb.mxu0 %v3461_v0 }
  0x61   : > { %v3444_v2 = vld [vmem:[#allocation4 + $0x480] sm:$0xf]  ;;  %v363_v3 = vld [vmem:[%s4780_s29 + $0x10] sm:$0xff]  ;;  %v3845_v11 = vor.u32 %v4299_v63, %v3844_v62  ;;  %1990 = vmatpush.bf16.msrb.mxu1 %v3589_v1 }
  0x62   : > { %v361_v4 = vld [vmem:[%s4780_s29] sm:$0xff]  ;;  %v4199_v6 = vld [vmem:[#allocation4 + $0x48c] sm:$0xf0]  ;;  %v4796_v8 = vpack.c.bf16 %v363_v3, %v363_v3  ;;  %2003 = vmatpush.bf16.msrb.mxu2 %v3717_v5  ;;  %v2982_v5 = vld [vmem:[#allocation4 + $0xf0] sm:$0xf0] }
  0x63   : > { %v3572_v7 = vld [vmem:[#allocation4 + $0x580] sm:$0xf]  ;;  %v4798_v9 = vpack.c.bf16 %v361_v4, %v361_v4  ;;  %v4231_v12 = vld [vmem:[#allocation4 + $0x58c] sm:$0xf0]  ;;  %v3445_v18 = vor.u32 %v4199_v6, %v3444_v2  ;;  %2016 = vmatpush.bf16.msrb.mxu3 %v3845_v11  ;;  %v4081_v4 = vld [vmem:[#allocation4 + $0xe4] sm:$0xf] }
  0x64   : > { %v3700_v13 = vld [vmem:[#allocation4 + $0x680] sm:$0xf]  ;;  %v4263_v14 = vld [vmem:[#allocation4 + $0x68c] sm:$0xf0]  ;;  %1957 = vmatmul.bf16.vlgmr.msra.gmra.mxu2 %v4796_v8  ;;  %v3573_v20 = vor.u32 %v4231_v12, %v3572_v7  ;;  %v4113_v6 = vld [vmem:[#allocation4 + $0x1e4] sm:$0xf] }
  0x65   : > { %v3828_v16 = vld [vmem:[#allocation4 + $0x780] sm:$0xf]  ;;  %v4295_v17 = vld [vmem:[#allocation4 + $0x78c] sm:$0xf0]  ;;  %1931 = vmatmul.bf16.vlgmr.msra.gmra.mxu0 %v4798_v9  ;;  %v3701_v21 = vor.u32 %v4263_v14, %v3700_v13  ;;  %v4145_v11 = vld [vmem:[#allocation4 + $0x2e4] sm:$0xf] }
  0x66   : > { %v3428_v22 = vld [vmem:[#allocation4 + $0x460] sm:$0xf]  ;;  %v4195_v23 = vld [vmem:[#allocation4 + $0x46c] sm:$0xf0]  ;;  %v3829_v26 = vor.u32 %v4295_v17, %v3828_v16  ;;  %1978 = vmatpush.bf16.msrb.mxu0 %v3445_v18  ;;  %1991 = vmatpush.bf16.msrb.mxu1 %v3573_v20  ;;  %v3238_v12 = vld [vmem:[#allocation4 + $0x2f0] sm:$0xf0]  ;;  %v2985_v20 = vor.u32 %v4081_v4, %v2982_v5 }
  0x67   : > { %v3556_v24 = vld [vmem:[#allocation4 + $0x560] sm:$0xf]  ;;  %v4227_v27 = vld [vmem:[#allocation4 + $0x56c] sm:$0xf0]  ;;  %v3429_v32 = vor.u32 %v4195_v23, %v3428_v22  ;;  %2004 = vmatpush.bf16.msrb.mxu2 %v3701_v21  ;;  %v4177_v16 = vld [vmem:[#allocation4 + $0x3e4] sm:$0xf] }
  0x68   : > { %v3684_v28 = vld [vmem:[#allocation4 + $0x660] sm:$0xf]  ;;  %v4259_v29 = vld [vmem:[#allocation4 + $0x66c] sm:$0xf0]  ;;  %v3557_v33 = vor.u32 %v4227_v27, %v3556_v24  ;;  %2017 = vmatpush.bf16.msrb.mxu3 %v3829_v26  ;;  %v3366_v17 = vld [vmem:[#allocation4 + $0x3f0] sm:$0xf0]  ;;  %v3113_v24 = vor.u32 %v4113_v6, %v3110_v10  ;;  %v3241_v26 = vor.u32 %v4145_v11, %v3238_v12 }
  0x69   : > { %v3812_v30 = vld [vmem:[#allocation4 + $0x760] sm:$0xf]  ;;  %v4291_v31 = vld [vmem:[#allocation4 + $0x76c] sm:$0xf0]  ;;  %v3685_v34 = vor.u32 %v4259_v29, %v3684_v28  ;;  %v4077_v21 = vld [vmem:[#allocation4 + $0xc4] sm:$0xf] }
  0x6a   : > { %v3412_v35 = vld [vmem:[#allocation4 + $0x440] sm:$0xf]  ;;  %v4191_v36 = vld [vmem:[#allocation4 + $0x44c] sm:$0xf0]  ;;  %v3813_v38 = vor.u32 %v4291_v31, %v3812_v30  ;;  %1979 = vmatpush.bf16.msrb.mxu0 %v3429_v32  ;;  %1992 = vmatpush.bf16.msrb.mxu1 %v3557_v33  ;;  %v368_v23 = vld [vmem:[%s4780_s29 + $0x38] sm:$0xff]  ;;  %v3369_v30 = vor.u32 %v4177_v16, %v3366_v17 }
  0x6b   : > { %v3540_v37 = vld [vmem:[#allocation4 + $0x540] sm:$0xf]  ;;  %v4223_v39 = vld [vmem:[#allocation4 + $0x54c] sm:$0xf0]  ;;  %v3413_v44 = vor.u32 %v4191_v36, %v3412_v35  ;;  %2005 = vmatpush.bf16.msrb.mxu2 %v3685_v34  ;;  %v2966_v27 = vld [vmem:[#allocation4 + $0xd0] sm:$0xf0] }
  0x6c   : > { %v3668_v40 = vld [vmem:[#allocation4 + $0x640] sm:$0xf]  ;;  %v4255_v41 = vld [vmem:[#allocation4 + $0x64c] sm:$0xf0]  ;;  %v3541_v45 = vor.u32 %v4223_v39, %v3540_v37  ;;  %2018 = vmatpush.bf16.msrb.mxu3 %v3813_v38  ;;  %v4109_v28 = vld [vmem:[#allocation4 + $0x1c4] sm:$0xf]  ;;  %v4818_v38 = vpack.c.bf16 %v368_v23, %v368_v23  ;;  %v2969_v39 = vor.u32 %v4077_v21, %v2966_v27 }
  0x6d   : > { %v3796_v42 = vld [vmem:[#allocation4 + $0x740] sm:$0xf]  ;;  %v4287_v43 = vld [vmem:[#allocation4 + $0x74c] sm:$0xf0]  ;;  %v3669_v46 = vor.u32 %v4255_v41, %v3668_v40  ;;  %v366_v29 = vld [vmem:[%s4780_s29 + $0x28] sm:$0xff] }
  0x6e   : > { %v3396_v47 = vld [vmem:[#allocation4 + $0x420] sm:$0xf]  ;;  %v4187_v48 = vld [vmem:[#allocation4 + $0x42c] sm:$0xf0]  ;;  %v3797_v50 = vor.u32 %v4287_v43, %v3796_v42  ;;  %1980 = vmatpush.bf16.msrb.mxu0 %v3413_v44  ;;  %1993 = vmatpush.bf16.msrb.mxu1 %v3541_v45  ;;  %v3094_v31 = vld [vmem:[#allocation4 + $0x1d0] sm:$0xf0]  ;;  %v4820_v40 = vpack.c.bf16 %v366_v29, %v366_v29 }
  0x6f   : > { %v3524_v49 = vld [vmem:[#allocation4 + $0x520] sm:$0xf]  ;;  %v4219_v51 = vld [vmem:[#allocation4 + $0x52c] sm:$0xf0]  ;;  %v3397_v56 = vor.u32 %v4187_v48, %v3396_v47  ;;  %2006 = vmatpush.bf16.msrb.mxu2 %v3669_v46  ;;  %v4141_v32 = vld [vmem:[#allocation4 + $0x2c4] sm:$0xf]  ;;  %v3097_v41 = vor.u32 %v4109_v28, %v3094_v31 }
  0x70   : > { %v3652_v52 = vld [vmem:[#allocation4 + $0x620] sm:$0xf]  ;;  %v4251_v53 = vld [vmem:[#allocation4 + $0x62c] sm:$0xf0]  ;;  %v3525_v59 = vor.u32 %v4219_v51, %v3524_v49  ;;  %2019 = vmatpush.bf16.msrb.mxu3 %v3797_v50  ;;  %v3222_v33 = vld [vmem:[#allocation4 + $0x2d0] sm:$0xf0] }
  0x71   : > { %v3780_v54 = vld [vmem:[#allocation4 + $0x720] sm:$0xf]  ;;  %v4283_v55 = vld [vmem:[#allocation4 + $0x72c] sm:$0xf0]  ;;  %v3653_v60 = vor.u32 %v4251_v53, %v3652_v52  ;;  %v4173_v35 = vld [vmem:[#allocation4 + $0x3c4] sm:$0xf]  ;;  %v3225_v42 = vor.u32 %v4141_v32, %v3222_v33 }
  0x72   : > { %v3380_v57 = vld [vmem:[#allocation4 + $0x400] sm:$0xf]  ;;  %v4183_v58 = vld [vmem:[#allocation4 + $0x40c] sm:$0xf0]  ;;  %v3781_v0 = vor.u32 %v4283_v55, %v3780_v54  ;;  %1981 = vmatpush.bf16.msrb.mxu0 %v3397_v56  ;;  %1994 = vmatpush.bf16.msrb.mxu1 %v3525_v59  ;;  %v3350_v36 = vld [vmem:[#allocation4 + $0x3d0] sm:$0xf0] }
  0x73   : > { %v3508_v61 = vld [vmem:[#allocation4 + $0x500] sm:$0xf]  ;;  %v4215_v62 = vld [vmem:[#allocation4 + $0x50c] sm:$0xf0]  ;;  %v3381_v7 = vor.u32 %v4183_v58, %v3380_v57  ;;  %2007 = vmatpush.bf16.msrb.mxu2 %v3653_v60  ;;  %v4073_v43 = vld [vmem:[#allocation4 + $0xa4] sm:$0xf]  ;;  %v3353_v46 = vor.u32 %v4173_v35, %v3350_v36 }
  0x74   : > { %v3636_v63 = vld [vmem:[#allocation4 + $0x600] sm:$0xf]  ;;  %v4247_v1 = vld [vmem:[#allocation4 + $0x60c] sm:$0xf0]  ;;  %v3509_v13 = vor.u32 %v4215_v62, %v3508_v61  ;;  %2020 = vmatpush.bf16.msrb.mxu3 %v3781_v0  ;;  %v2950_v44 = vld [vmem:[#allocation4 + $0xb0] sm:$0xf0] }
  0x75   : > { %v3764_v2 = vld [vmem:[#allocation4 + $0x700] sm:$0xf]  ;;  %v4279_v3 = vld [vmem:[#allocation4 + $0x70c] sm:$0xf0]  ;;  %v3637_v14 = vor.u32 %v4247_v1, %v3636_v63  ;;  %v4105_v45 = vld [vmem:[#allocation4 + $0x1a4] sm:$0xf]  ;;  %v2953_v52 = vor.u32 %v4073_v43, %v2950_v44 }
  0x76   : > { %v367_v18 = vld [vmem:[%s4780_s29 + $0x30] sm:$0xff]  ;;  %v3765_v19 = vor.u32 %v4279_v3, %v3764_v2  ;;  %v365_v22 = vld [vmem:[%s4780_s29 + $0x20] sm:$0xff]  ;;  %1982 = vmatpush.bf16.msrb.mxu0 %v3381_v7  ;;  %1995 = vmatpush.bf16.msrb.mxu1 %v3509_v13 }
  0x77   : > { %v4814_v34 = vpack.c.bf16 %v367_v18, %v367_v18  ;;  %2008 = vmatpush.bf16.msrb.mxu2 %v3637_v14  ;;  %v4816_v37 = vpack.c.bf16 %v365_v22, %v365_v22  ;;  %v3078_v47 = vld [vmem:[#allocation4 + $0x1b0] sm:$0xf0]  ;;  %v4137_v48 = vld [vmem:[#allocation4 + $0x2a4] sm:$0xf] }
  0x78   : > { %2021 = vmatpush.bf16.msrb.mxu3 %v3765_v19  ;;  %v3206_v49 = vld [vmem:[#allocation4 + $0x2b0] sm:$0xf0]  ;;  %v4169_v50 = vld [vmem:[#allocation4 + $0x3a4] sm:$0xf]  ;;  %v3081_v53 = vor.u32 %v4105_v45, %v3078_v47 }
  0x79   : > { %v3334_v51 = vld [vmem:[#allocation4 + $0x3b0] sm:$0xf0]  ;;  %1983 = vmatmul.bf16.vlgmr.msrb.gmra.mxu0 %v4816_v37  ;;  %1996 = vmatmul.bf16.vlgmr.msrb.gmra.mxu1 %v4820_v40  ;;  %v3209_v54 = vor.u32 %v4137_v48, %v3206_v49  ;;  %v4069_v55 = vld [vmem:[#allocation4 + $0x84] sm:$0xf] }
  0x7a   : > { %2027 = vmatpush.bf16.msra.mxu0 %v2985_v20  ;;  %2040 = vmatpush.bf16.msra.mxu1 %v3113_v24  ;;  %v2934_v56 = vld [vmem:[#allocation4 + $0x90] sm:$0xf0]  ;;  %v4101_v57 = vld [vmem:[#allocation4 + $0x184] sm:$0xf]  ;;  %v3337_v58 = vor.u32 %v4169_v50, %v3334_v51 }
  0x7b   : > { %2053 = vmatpush.bf16.msra.mxu2 %v3241_v26  ;;  %2022 = vmatmul.bf16.vlgmr.msrb.gmra.mxu3 %v4818_v38  ;;  %v3062_v59 = vld [vmem:[#allocation4 + $0x190] sm:$0xf0]  ;;  %v4133_v60 = vld [vmem:[#allocation4 + $0x284] sm:$0xf]  ;;  %v2937_v0 = vor.u32 %v4069_v55, %v2934_v56 }
  0x7c   : > { %2066 = vmatpush.bf16.msra.mxu3 %v3369_v30  ;;  %2009 = vmatmul.bf16.vlgmr.msrb.gmra.mxu2 %v4814_v34  ;;  %v3190_v61 = vld [vmem:[#allocation4 + $0x290] sm:$0xf0]  ;;  %v4165_v62 = vld [vmem:[#allocation4 + $0x384] sm:$0xf]  ;;  %v3065_v1 = vor.u32 %v4101_v57, %v3062_v59 }
  0x7d   : > { %v3318_v63 = vld [vmem:[#allocation4 + $0x390] sm:$0xf0]  ;;  %v3193_v2 = vor.u32 %v4133_v60, %v3190_v61  ;;  %v4065_v3 = vld [vmem:[#allocation4 + $0x64] sm:$0xf] }
  0x7e   : > { %2028 = vmatpush.bf16.msra.mxu0 %v2969_v39  ;;  %2041 = vmatpush.bf16.msra.mxu1 %v3097_v41  ;;  %v2918_v4 = vld [vmem:[#allocation4 + $0x70] sm:$0xf0]  ;;  %v4097_v5 = vld [vmem:[#allocation4 + $0x164] sm:$0xf]  ;;  %v3321_v6 = vor.u32 %v4165_v62, %v3318_v63 }
  0x7f   : > { %2054 = vmatpush.bf16.msra.mxu2 %v3225_v42  ;;  %v3046_v7 = vld [vmem:[#allocation4 + $0x170] sm:$0xf0]  ;;  %v4129_v10 = vld [vmem:[#allocation4 + $0x264] sm:$0xf]  ;;  %v2921_v14 = vor.u32 %v4065_v3, %v2918_v4 }
  0x80   : > { %2067 = vmatpush.bf16.msra.mxu3 %v3353_v46  ;;  %v3174_v11 = vld [vmem:[#allocation4 + $0x270] sm:$0xf0]  ;;  %v4161_v12 = vld [vmem:[#allocation4 + $0x364] sm:$0xf]  ;;  %v3049_v16 = vor.u32 %v4097_v5, %v3046_v7 }
  0x81   : > { %v3302_v13 = vld [vmem:[#allocation4 + $0x370] sm:$0xf0]  ;;  %v3177_v17 = vor.u32 %v4129_v10, %v3174_v11  ;;  %v4061_v18 = vld [vmem:[#allocation4 + $0x44] sm:$0xf] }
  0x82   : > { %2029 = vmatpush.bf16.msra.mxu0 %v2953_v52  ;;  %2042 = vmatpush.bf16.msra.mxu1 %v3081_v53  ;;  %v2902_v19 = vld [vmem:[#allocation4 + $0x50] sm:$0xf0]  ;;  %v4093_v20 = vld [vmem:[#allocation4 + $0x144] sm:$0xf]  ;;  %v3305_v21 = vor.u32 %v4161_v12, %v3302_v13 }
  0x83   : > { %2055 = vmatpush.bf16.msra.mxu2 %v3209_v54  ;;  %v3030_v22 = vld [vmem:[#allocation4 + $0x150] sm:$0xf0]  ;;  %v4125_v23 = vld [vmem:[#allocation4 + $0x244] sm:$0xf]  ;;  %v2905_v28 = vor.u32 %v4061_v18, %v2902_v19 }
  0x84   : > { %2068 = vmatpush.bf16.msra.mxu3 %v3337_v58  ;;  %v3158_v24 = vld [vmem:[#allocation4 + $0x250] sm:$0xf0]  ;;  %v4157_v26 = vld [vmem:[#allocation4 + $0x344] sm:$0xf]  ;;  %v3033_v29 = vor.u32 %v4093_v20, %v3030_v22 }
  0x85   : > { %v3286_v27 = vld [vmem:[#allocation4 + $0x350] sm:$0xf0]  ;;  %v3161_v30 = vor.u32 %v4125_v23, %v3158_v24  ;;  %v4057_v31 = vld [vmem:[#allocation4 + $0x24] sm:$0xf] }
  0x86   : > { %2030 = vmatpush.bf16.msra.mxu0 %v2937_v0  ;;  %2043 = vmatpush.bf16.msra.mxu1 %v3065_v1  ;;  %v2886_v32 = vld [vmem:[#allocation4 + $0x30] sm:$0xf0]  ;;  %v4089_v33 = vld [vmem:[#allocation4 + $0x124] sm:$0xf]  ;;  %v3289_v35 = vor.u32 %v4157_v26, %v3286_v27 }
  0x87   : > { %2056 = vmatpush.bf16.msra.mxu2 %v3193_v2  ;;  %v3014_v36 = vld [vmem:[#allocation4 + $0x130] sm:$0xf0]  ;;  %v4121_v39 = vld [vmem:[#allocation4 + $0x224] sm:$0xf]  ;;  %v2889_v44 = vor.u32 %v4057_v31, %v2886_v32 }
  0x88   : > { %2069 = vmatpush.bf16.msra.mxu3 %v3321_v6  ;;  %v3142_v41 = vld [vmem:[#allocation4 + $0x230] sm:$0xf0]  ;;  %v4153_v42 = vld [vmem:[#allocation4 + $0x324] sm:$0xf]  ;;  %v3017_v47 = vor.u32 %v4089_v33, %v3014_v36 }
  0x89   : > { %v3270_v43 = vld [vmem:[#allocation4 + $0x330] sm:$0xf0]  ;;  %v4053_v45 = vld [vmem:[#allocation4 + $0x4] sm:$0xf]  ;;  %v3145_v48 = vor.u32 %v4121_v39, %v3142_v41 }
  0x8a   : > { %2031 = vmatpush.bf16.msra.mxu0 %v2921_v14  ;;  %2044 = vmatpush.bf16.msra.mxu1 %v3049_v16  ;;  %v2870_v46 = vld [vmem:[#allocation4 + $0x10] sm:$0xf0]  ;;  %v4085_v49 = vld [vmem:[#allocation4 + $0x104] sm:$0xf]  ;;  %v3273_v52 = vor.u32 %v4153_v42, %v3270_v43 }
  0x8b   : > { %2057 = vmatpush.bf16.msra.mxu2 %v3177_v17  ;;  %v2998_v50 = vld [vmem:[#allocation4 + $0x110] sm:$0xf0]  ;;  %v4117_v51 = vld [vmem:[#allocation4 + $0x204] sm:$0xf]  ;;  %v2873_v59 = vor.u32 %v4053_v45, %v2870_v46 }
  0x8c   : > { %2070 = vmatpush.bf16.msra.mxu3 %v3305_v21  ;;  %v3126_v53 = vld [vmem:[#allocation4 + $0x210] sm:$0xf0]  ;;  %v4149_v54 = vld [vmem:[#allocation4 + $0x304] sm:$0xf]  ;;  %v3001_v63 = vor.u32 %v4085_v49, %v2998_v50 }
  0x8d   : > { %v3254_v55 = vld [vmem:[#allocation4 + $0x310] sm:$0xf0]  ;;  %v4209_v56 = vld [vmem:[#allocation4 + $0x4e4] sm:$0xf]  ;;  %v3129_v0 = vor.u32 %v4117_v51, %v3126_v53 }
  0x8e   : > { %2032 = vmatpush.bf16.msra.mxu0 %v2905_v28  ;;  %2045 = vmatpush.bf16.msra.mxu1 %v3033_v29  ;;  %v3494_v57 = vld [vmem:[#allocation4 + $0x4f0] sm:$0xf0]  ;;  %v4241_v58 = vld [vmem:[#allocation4 + $0x5e4] sm:$0xf]  ;;  %v3257_v3 = vor.u32 %v4149_v54, %v3254_v55 }
  0x8f   : > { %2058 = vmatpush.bf16.msra.mxu2 %v3161_v30  ;;  %v3622_v60 = vld [vmem:[#allocation4 + $0x5f0] sm:$0xf0]  ;;  %v4273_v61 = vld [vmem:[#allocation4 + $0x6e4] sm:$0xf]  ;;  %v3497_v4 = vor.u32 %v4209_v56, %v3494_v57 }
  0x90   : > { %2071 = vmatpush.bf16.msra.mxu3 %v3289_v35  ;;  %v3750_v62 = vld [vmem:[#allocation4 + $0x6f0] sm:$0xf0]  ;;  %v4305_v1 = vld [vmem:[#allocation4 + $0x7e4] sm:$0xf]  ;;  %v3625_v5 = vor.u32 %v4241_v58, %v3622_v60 }
  0x91   : > { %v3878_v2 = vld [vmem:[#allocation4 + $0x7f0] sm:$0xf0]  ;;  %v3753_v6 = vor.u32 %v4273_v61, %v3750_v62  ;;  %v4205_v7 = vld [vmem:[#allocation4 + $0x4c4] sm:$0xf] }
  0x92   : > { %2033 = vmatpush.bf16.msra.mxu0 %v2889_v44  ;;  %2046 = vmatpush.bf16.msra.mxu1 %v3017_v47  ;;  %v3478_v10 = vld [vmem:[#allocation4 + $0x4d0] sm:$0xf0]  ;;  %v4237_v11 = vld [vmem:[#allocation4 + $0x5c4] sm:$0xf]  ;;  %v3881_v12 = vor.u32 %v4305_v1, %v3878_v2 }
  0x93   : > { %2059 = vmatpush.bf16.msra.mxu2 %v3145_v48  ;;  %v3606_v13 = vld [vmem:[#allocation4 + $0x5d0] sm:$0xf0]  ;;  %v4269_v14 = vld [vmem:[#allocation4 + $0x6c4] sm:$0xf]  ;;  %v3481_v19 = vor.u32 %v4205_v7, %v3478_v10 }
  0x94   : > { %2072 = vmatpush.bf16.msra.mxu3 %v3273_v52  ;;  %v3734_v16 = vld [vmem:[#allocation4 + $0x6d0] sm:$0xf0]  ;;  %v4301_v17 = vld [vmem:[#allocation4 + $0x7c4] sm:$0xf]  ;;  %v3609_v20 = vor.u32 %v4237_v11, %v3606_v13 }
  0x95   : > { %v3862_v18 = vld [vmem:[#allocation4 + $0x7d0] sm:$0xf0]  ;;  %v3737_v21 = vor.u32 %v4269_v14, %v3734_v16  ;;  %v4201_v22 = vld [vmem:[#allocation4 + $0x4a4] sm:$0xf] }
  0x96   : > { %2034 = vmatpush.bf16.msra.mxu0 %v2873_v59  ;;  %2047 = vmatpush.bf16.msra.mxu1 %v3001_v63  ;;  %v3462_v23 = vld [vmem:[#allocation4 + $0x4b0] sm:$0xf0]  ;;  %v4233_v24 = vld [vmem:[#allocation4 + $0x5a4] sm:$0xf]  ;;  %v3865_v26 = vor.u32 %v4301_v17, %v3862_v18 }
  0x97   : > { %2060 = vmatpush.bf16.msra.mxu2 %v3129_v0  ;;  %v3590_v27 = vld [vmem:[#allocation4 + $0x5b0] sm:$0xf0]  ;;  %v4265_v28 = vld [vmem:[#allocation4 + $0x6a4] sm:$0xf]  ;;  %v3465_v32 = vor.u32 %v4201_v22, %v3462_v23 }
  0x98   : > { %2073 = vmatpush.bf16.msra.mxu3 %v3257_v3  ;;  %v3718_v29 = vld [vmem:[#allocation4 + $0x6b0] sm:$0xf0]  ;;  %v4297_v30 = vld [vmem:[#allocation4 + $0x7a4] sm:$0xf]  ;;  %v3593_v33 = vor.u32 %v4233_v24, %v3590_v27 }
  0x99   : > { %v3846_v31 = vld [vmem:[#allocation4 + $0x7b0] sm:$0xf0]  ;;  %2035 = vmatmul.bf16.vlgmr.msra.gmra.mxu0 %v4798_v9  ;;  %2048 = vmatmul.bf16.vlgmr.msra.gmra.mxu1 %v4807_v25  ;;  %v3721_v35 = vor.u32 %v4265_v28, %v3718_v29  ;;  %v4197_v36 = vld [vmem:[#allocation4 + $0x484] sm:$0xf] }
  0x9a   : > { %2079 = vmatpush.bf16.msrb.mxu0 %v3497_v4  ;;  %2092 = vmatpush.bf16.msrb.mxu1 %v3625_v5  ;;  %v3446_v39 = vld [vmem:[#allocation4 + $0x490] sm:$0xf0]  ;;  %v4229_v41 = vld [vmem:[#allocation4 + $0x584] sm:$0xf]  ;;  %v3849_v42 = vor.u32 %v4297_v30, %v3846_v31 }
  0x9b   : > { %2105 = vmatpush.bf16.msrb.mxu2 %v3753_v6  ;;  %2074 = vmatmul.bf16.vlgmr.msra.gmra.mxu3 %v4801_v15  ;;  %v3574_v43 = vld [vmem:[#allocation4 + $0x590] sm:$0xf0]  ;;  %v4261_v44 = vld [vmem:[#allocation4 + $0x684] sm:$0xf]  ;;  %v3449_v48 = vor.u32 %v4197_v36, %v3446_v39  ;;  %v2988_v39 = vld [vmem:[#allocation4 + $0xe8] sm:$0xf] }
  0x9c   : > { %2118 = vmatpush.bf16.msrb.mxu3 %v3881_v12  ;;  %2061 = vmatmul.bf16.vlgmr.msra.gmra.mxu2 %v4796_v8  ;;  %v3702_v45 = vld [vmem:[#allocation4 + $0x690] sm:$0xf0]  ;;  %v4293_v46 = vld [vmem:[#allocation4 + $0x784] sm:$0xf]  ;;  %v3577_v49 = vor.u32 %v4229_v41, %v3574_v43  ;;  %v4084_v41 = vld [vmem:[#allocation4 + $0xf4] sm:$0xf0] }
  0x9d   : > { %v3830_v47 = vld [vmem:[#allocation4 + $0x790] sm:$0xf0]  ;;  %v3705_v50 = vor.u32 %v4261_v44, %v3702_v45  ;;  %v4193_v51 = vld [vmem:[#allocation4 + $0x464] sm:$0xf]  ;;  %v4116_v44 = vld [vmem:[#allocation4 + $0x1f4] sm:$0xf0] }
  0x9e   : > { %2080 = vmatpush.bf16.msrb.mxu0 %v3481_v19  ;;  %2093 = vmatpush.bf16.msrb.mxu1 %v3609_v20  ;;  %v3430_v52 = vld [vmem:[#allocation4 + $0x470] sm:$0xf0]  ;;  %v4225_v53 = vld [vmem:[#allocation4 + $0x564] sm:$0xf]  ;;  %v3833_v54 = vor.u32 %v4293_v46, %v3830_v47  ;;  %v3244_v45 = vld [vmem:[#allocation4 + $0x2e8] sm:$0xf] }
  0x9f   : > { %2106 = vmatpush.bf16.msrb.mxu2 %v3737_v21  ;;  %v3558_v55 = vld [vmem:[#allocation4 + $0x570] sm:$0xf0]  ;;  %v4257_v56 = vld [vmem:[#allocation4 + $0x664] sm:$0xf]  ;;  %v3433_v60 = vor.u32 %v4193_v51, %v3430_v52  ;;  %v4148_v46 = vld [vmem:[#allocation4 + $0x2f4] sm:$0xf0]  ;;  %v2989_v52 = vor.u32 %v4084_v41, %v2988_v39 }
  0xa0   : > { %2119 = vmatpush.bf16.msrb.mxu3 %v3865_v26  ;;  %v3686_v57 = vld [vmem:[#allocation4 + $0x670] sm:$0xf0]  ;;  %v4289_v58 = vld [vmem:[#allocation4 + $0x764] sm:$0xf]  ;;  %v3561_v61 = vor.u32 %v4225_v53, %v3558_v55  ;;  %v2972_v55 = vld [vmem:[#allocation4 + $0xc8] sm:$0xf] }
  0xa1   : > { %v3814_v59 = vld [vmem:[#allocation4 + $0x770] sm:$0xf0]  ;;  %v3689_v62 = vor.u32 %v4257_v56, %v3686_v57  ;;  %v4189_v63 = vld [vmem:[#allocation4 + $0x444] sm:$0xf]  ;;  %v4080_v56 = vld [vmem:[#allocation4 + $0xd4] sm:$0xf0] }
  0xa2   : > { %2081 = vmatpush.bf16.msrb.mxu0 %v3465_v32  ;;  %2094 = vmatpush.bf16.msrb.mxu1 %v3593_v33  ;;  %v3414_v0 = vld [vmem:[#allocation4 + $0x450] sm:$0xf0]  ;;  %v4221_v1 = vld [vmem:[#allocation4 + $0x544] sm:$0xf]  ;;  %v3817_v2 = vor.u32 %v4289_v58, %v3814_v59  ;;  %v3100_v57 = vld [vmem:[#allocation4 + $0x1c8] sm:$0xf] }
  0xa3   : > { %2107 = vmatpush.bf16.msrb.mxu2 %v3721_v35  ;;  %v3542_v3 = vld [vmem:[#allocation4 + $0x550] sm:$0xf0]  ;;  %v4253_v4 = vld [vmem:[#allocation4 + $0x644] sm:$0xf]  ;;  %v3417_v10 = vor.u32 %v4189_v63, %v3414_v0  ;;  %v4112_v59 = vld [vmem:[#allocation4 + $0x1d4] sm:$0xf0]  ;;  %v2973_v0 = vor.u32 %v4080_v56, %v2972_v55 }
  0xa4   : > { %2120 = vmatpush.bf16.msrb.mxu3 %v3849_v42  ;;  %v3670_v5 = vld [vmem:[#allocation4 + $0x650] sm:$0xf0]  ;;  %v4285_v6 = vld [vmem:[#allocation4 + $0x744] sm:$0xf]  ;;  %v3545_v11 = vor.u32 %v4221_v1, %v3542_v3  ;;  %v3116_v42 = vld [vmem:[#allocation4 + $0x1e8] sm:$0xf]  ;;  %v3101_v1 = vor.u32 %v4112_v59, %v3100_v57 }
  0xa5   : > { %v3798_v7 = vld [vmem:[#allocation4 + $0x750] sm:$0xf0]  ;;  %v3673_v12 = vor.u32 %v4253_v4, %v3670_v5  ;;  %v4185_v13 = vld [vmem:[#allocation4 + $0x424] sm:$0xf]  ;;  %v3117_v53 = vor.u32 %v4116_v44, %v3116_v42  ;;  %v4176_v63 = vld [vmem:[#allocation4 + $0x3d4] sm:$0xf0] }
  0xa6   : > { %2082 = vmatpush.bf16.msrb.mxu0 %v3449_v48  ;;  %2095 = vmatpush.bf16.msrb.mxu1 %v3577_v49  ;;  %v3398_v14 = vld [vmem:[#allocation4 + $0x430] sm:$0xf0]  ;;  %v4217_v16 = vld [vmem:[#allocation4 + $0x524] sm:$0xf]  ;;  %v3801_v17 = vor.u32 %v4285_v6, %v3798_v7  ;;  %v3372_v49 = vld [vmem:[#allocation4 + $0x3e8] sm:$0xf] }
  0xa7   : > { %2108 = vmatpush.bf16.msrb.mxu2 %v3705_v50  ;;  %v3526_v18 = vld [vmem:[#allocation4 + $0x530] sm:$0xf0]  ;;  %v4249_v19 = vld [vmem:[#allocation4 + $0x624] sm:$0xf]  ;;  %v3401_v23 = vor.u32 %v4185_v13, %v3398_v14  ;;  %v4180_v50 = vld [vmem:[#allocation4 + $0x3f4] sm:$0xf0] }
  0xa8   : > { %2121 = vmatpush.bf16.msrb.mxu3 %v3833_v54  ;;  %v3654_v20 = vld [vmem:[#allocation4 + $0x630] sm:$0xf0]  ;;  %v4281_v21 = vld [vmem:[#allocation4 + $0x724] sm:$0xf]  ;;  %v3529_v27 = vor.u32 %v4217_v16, %v3526_v18  ;;  %v3245_v54 = vor.u32 %v4148_v46, %v3244_v45  ;;  %v3373_v58 = vor.u32 %v4180_v50, %v3372_v49  ;;  %v2956_v3 = vld [vmem:[#allocation4 + $0xa8] sm:$0xf] }
  0xa9   : > { %v3782_v22 = vld [vmem:[#allocation4 + $0x730] sm:$0xf0]  ;;  %v4181_v24 = vld [vmem:[#allocation4 + $0x404] sm:$0xf]  ;;  %v3657_v28 = vor.u32 %v4249_v19, %v3654_v20  ;;  %v4076_v4 = vld [vmem:[#allocation4 + $0xb4] sm:$0xf0] }
  0xaa   : > { %2083 = vmatpush.bf16.msrb.mxu0 %v3433_v60  ;;  %2096 = vmatpush.bf16.msrb.mxu1 %v3561_v61  ;;  %v3382_v26 = vld [vmem:[#allocation4 + $0x410] sm:$0xf0]  ;;  %v4213_v29 = vld [vmem:[#allocation4 + $0x504] sm:$0xf]  ;;  %v3785_v32 = vor.u32 %v4281_v21, %v3782_v22  ;;  %v3228_v60 = vld [vmem:[#allocation4 + $0x2c8] sm:$0xf]  ;;  %v2957_v14 = vor.u32 %v4076_v4, %v2956_v3 }
  0xab   : > { %2109 = vmatpush.bf16.msrb.mxu2 %v3689_v62  ;;  %v3510_v30 = vld [vmem:[#allocation4 + $0x510] sm:$0xf0]  ;;  %v4245_v31 = vld [vmem:[#allocation4 + $0x604] sm:$0xf]  ;;  %v3385_v43 = vor.u32 %v4181_v24, %v3382_v26  ;;  %v4144_v61 = vld [vmem:[#allocation4 + $0x2d4] sm:$0xf0] }
  0xac   : > { %2122 = vmatpush.bf16.msrb.mxu3 %v3817_v2  ;;  %v3638_v33 = vld [vmem:[#allocation4 + $0x610] sm:$0xf0]  ;;  %v4277_v35 = vld [vmem:[#allocation4 + $0x704] sm:$0xf]  ;;  %v3513_v47 = vor.u32 %v4213_v29, %v3510_v30  ;;  %v3356_v62 = vld [vmem:[#allocation4 + $0x3c8] sm:$0xf]  ;;  %v3229_v2 = vor.u32 %v4144_v61, %v3228_v60 }
  0xad   : > { %v3766_v36 = vld [vmem:[#allocation4 + $0x710] sm:$0xf0]  ;;  %v3641_v48 = vor.u32 %v4245_v31, %v3638_v33  ;;  %v3084_v5 = vld [vmem:[#allocation4 + $0x1a8] sm:$0xf]  ;;  %v3357_v6 = vor.u32 %v4176_v63, %v3356_v62  ;;  %v4108_v7 = vld [vmem:[#allocation4 + $0x1b4] sm:$0xf0] }
  0xae   : > { %2084 = vmatpush.bf16.msrb.mxu0 %v3417_v10  ;;  %2097 = vmatpush.bf16.msrb.mxu1 %v3545_v11  ;;  %v3769_v51 = vor.u32 %v4277_v35, %v3766_v36  ;;  %v3212_v10 = vld [vmem:[#allocation4 + $0x2a8] sm:$0xf]  ;;  %v4140_v11 = vld [vmem:[#allocation4 + $0x2b4] sm:$0xf0]  ;;  %v3085_v16 = vor.u32 %v4108_v7, %v3084_v5 }
  0xaf   : > { %2110 = vmatpush.bf16.msrb.mxu2 %v3673_v12  ;;  %v3340_v12 = vld [vmem:[#allocation4 + $0x3a8] sm:$0xf]  ;;  %v4172_v13 = vld [vmem:[#allocation4 + $0x3b4] sm:$0xf0] }
  0xb0   : > { %2123 = vmatpush.bf16.msrb.mxu3 %v3801_v17  ;;  %v3213_v17 = vor.u32 %v4140_v11, %v3212_v10  ;;  %v2940_v18 = vld [vmem:[#allocation4 + $0x88] sm:$0xf]  ;;  %v4072_v19 = vld [vmem:[#allocation4 + $0x94] sm:$0xf0]  ;;  %v3341_v21 = vor.u32 %v4172_v13, %v3340_v12 }
  0xb1   : > { %v3068_v20 = vld [vmem:[#allocation4 + $0x188] sm:$0xf]  ;;  %v4104_v22 = vld [vmem:[#allocation4 + $0x194] sm:$0xf0] }
  0xb2   : > { %2085 = vmatpush.bf16.msrb.mxu0 %v3401_v23  ;;  %2098 = vmatpush.bf16.msrb.mxu1 %v3529_v27  ;;  %v3196_v23 = vld [vmem:[#allocation4 + $0x288] sm:$0xf]  ;;  %v4136_v24 = vld [vmem:[#allocation4 + $0x294] sm:$0xf0]  ;;  %v3069_v29 = vor.u32 %v4104_v22, %v3068_v20 }
  0xb3   : > { %2111 = vmatpush.bf16.msrb.mxu2 %v3657_v28  ;;  %v3324_v26 = vld [vmem:[#allocation4 + $0x388] sm:$0xf]  ;;  %v4168_v27 = vld [vmem:[#allocation4 + $0x394] sm:$0xf0]  ;;  %v2941_v28 = vor.u32 %v4072_v19, %v2940_v18  ;;  %v3197_v30 = vor.u32 %v4136_v24, %v3196_v23 }
  0xb4   : > { %2124 = vmatpush.bf16.msrb.mxu3 %v3785_v32  ;;  %v2924_v31 = vld [vmem:[#allocation4 + $0x68] sm:$0xf]  ;;  %v4068_v32 = vld [vmem:[#allocation4 + $0x74] sm:$0xf0]  ;;  %v3325_v35 = vor.u32 %v4168_v27, %v3324_v26 }
  0xb5   : > { %v3052_v33 = vld [vmem:[#allocation4 + $0x168] sm:$0xf]  ;;  %v4100_v36 = vld [vmem:[#allocation4 + $0x174] sm:$0xf0]  ;;  %v2925_v44 = vor.u32 %v4068_v32, %v2924_v31 }
  0xb6   : > { %2086 = vmatpush.bf16.msrb.mxu0 %v3385_v43  ;;  %2099 = vmatpush.bf16.msrb.mxu1 %v3513_v47  ;;  %v3180_v39 = vld [vmem:[#allocation4 + $0x268] sm:$0xf]  ;;  %v4132_v41 = vld [vmem:[#allocation4 + $0x274] sm:$0xf0]  ;;  %v3053_v45 = vor.u32 %v4100_v36, %v3052_v33 }
  0xb7   : > { %2112 = vmatpush.bf16.msrb.mxu2 %v3641_v48  ;;  %v3308_v42 = vld [vmem:[#allocation4 + $0x368] sm:$0xf]  ;;  %v4164_v43 = vld [vmem:[#allocation4 + $0x374] sm:$0xf0]  ;;  %v3181_v46 = vor.u32 %v4132_v41, %v3180_v39 }
  0xb8   : > { %2125 = vmatpush.bf16.msrb.mxu3 %v3769_v51  ;;  %v2908_v47 = vld [vmem:[#allocation4 + $0x48] sm:$0xf]  ;;  %v4064_v48 = vld [vmem:[#allocation4 + $0x54] sm:$0xf0]  ;;  %v3309_v50 = vor.u32 %v4164_v43, %v3308_v42 }
  0xb9   : > { %2087 = vmatmul.bf16.vlgmr.msrb.gmra.mxu0 %v4816_v37  ;;  %2100 = vmatmul.bf16.vlgmr.msrb.gmra.mxu1 %v4820_v40  ;;  %v3036_v49 = vld [vmem:[#allocation4 + $0x148] sm:$0xf]  ;;  %v4096_v51 = vld [vmem:[#allocation4 + $0x154] sm:$0xf0]  ;;  %v2909_v56 = vor.u32 %v4064_v48, %v2908_v47 }
  0xba   : > { %2131 = vmatpush.bf16.msra.mxu0 %v2989_v52  ;;  %2144 = vmatpush.bf16.msra.mxu1 %v3117_v53  ;;  %v3164_v52 = vld [vmem:[#allocation4 + $0x248] sm:$0xf]  ;;  %v4128_v53 = vld [vmem:[#allocation4 + $0x254] sm:$0xf0]  ;;  %v3037_v57 = vor.u32 %v4096_v51, %v3036_v49 }
  0xbb   : > { %2157 = vmatpush.bf16.msra.mxu2 %v3245_v54  ;;  %2126 = vmatmul.bf16.vlgmr.msrb.gmra.mxu3 %v4818_v38  ;;  %v3292_v54 = vld [vmem:[#allocation4 + $0x348] sm:$0xf]  ;;  %v4160_v55 = vld [vmem:[#allocation4 + $0x354] sm:$0xf0] }
  0xbc   : > { %2170 = vmatpush.bf16.msra.mxu3 %v3373_v58  ;;  %2113 = vmatmul.bf16.vlgmr.msrb.gmra.mxu2 %v4814_v34  ;;  %v3165_v58 = vor.u32 %v4128_v53, %v3164_v52  ;;  %v2892_v59 = vld [vmem:[#allocation4 + $0x28] sm:$0xf]  ;;  %v4060_v60 = vld [vmem:[#allocation4 + $0x34] sm:$0xf0]  ;;  %v3293_v62 = vor.u32 %v4160_v55, %v3292_v54 }
  0xbd   : > { %v3020_v61 = vld [vmem:[#allocation4 + $0x128] sm:$0xf]  ;;  %v4092_v63 = vld [vmem:[#allocation4 + $0x134] sm:$0xf0]  ;;  %v2893_v4 = vor.u32 %v4060_v60, %v2892_v59 }
  0xbe   : > { %2132 = vmatpush.bf16.msra.mxu0 %v2973_v0  ;;  %2145 = vmatpush.bf16.msra.mxu1 %v3101_v1  ;;  %v3148_v0 = vld [vmem:[#allocation4 + $0x228] sm:$0xf]  ;;  %v4124_v1 = vld [vmem:[#allocation4 + $0x234] sm:$0xf0]  ;;  %v3021_v7 = vor.u32 %v4092_v63, %v3020_v61 }
  0xbf   : > { %2158 = vmatpush.bf16.msra.mxu2 %v3229_v2  ;;  %v3276_v2 = vld [vmem:[#allocation4 + $0x328] sm:$0xf]  ;;  %v4156_v3 = vld [vmem:[#allocation4 + $0x334] sm:$0xf0]  ;;  %v3149_v10 = vor.u32 %v4124_v1, %v3148_v0 }
  0xc0   : > { %2171 = vmatpush.bf16.msra.mxu3 %v3357_v6  ;;  %v2876_v5 = vld [vmem:[#allocation4 + $0x8] sm:$0xf]  ;;  %v4056_v6 = vld [vmem:[#allocation4 + $0x14] sm:$0xf0] }
  0xc1   : > { %v3004_v11 = vld [vmem:[#allocation4 + $0x108] sm:$0xf]  ;;  %v4088_v12 = vld [vmem:[#allocation4 + $0x114] sm:$0xf0]  ;;  %v2877_v22 = vor.u32 %v4056_v6, %v2876_v5  ;;  %v4838_v6 = vld [vmem:[#allocation6] sm:$0xf] }
  0xc2   : > { %2133 = vmatpush.bf16.msra.mxu0 %v2957_v14  ;;  %2146 = vmatpush.bf16.msra.mxu1 %v3085_v16  ;;  %v3132_v13 = vld [vmem:[#allocation4 + $0x208] sm:$0xf]  ;;  %v3277_v14 = vor.u32 %v4156_v3, %v3276_v2  ;;  %v4120_v16 = vld [vmem:[#allocation4 + $0x214] sm:$0xf0]  ;;  %v3005_v27 = vor.u32 %v4088_v12, %v3004_v11 }
  0xc3   : > { %2159 = vmatpush.bf16.msra.mxu2 %v3213_v17  ;;  %v3260_v17 = vld [vmem:[#allocation4 + $0x308] sm:$0xf]  ;;  %v4152_v18 = vld [vmem:[#allocation4 + $0x314] sm:$0xf0] }
  0xc4   : > { %2172 = vmatpush.bf16.msra.mxu3 %v3341_v21  ;;  %v3500_v19 = vld [vmem:[#allocation4 + $0x4e8] sm:$0xf]  ;;  %v4212_v20 = vld [vmem:[#allocation4 + $0x4f4] sm:$0xf0]  ;;  %v3261_v31 = vor.u32 %v4152_v18, %v3260_v17  ;;  %v635_v18 = vperm.slane %v4838_v6, 0 }
  0xc5   : > { %v3628_v21 = vld [vmem:[#allocation4 + $0x5e8] sm:$0xf]  ;;  %v4244_v23 = vld [vmem:[#allocation4 + $0x5f4] sm:$0xf0]  ;;  %v3501_v32 = vor.u32 %v4212_v20, %v3500_v19 }
  0xc6   : > { %2134 = vmatpush.bf16.msra.mxu0 %v2941_v28  ;;  %2147 = vmatpush.bf16.msra.mxu1 %v3069_v29  ;;  %v3756_v24 = vld [vmem:[#allocation4 + $0x6e8] sm:$0xf]  ;;  %v4276_v26 = vld [vmem:[#allocation4 + $0x6f4] sm:$0xf0]  ;;  %v3133_v28 = vor.u32 %v4120_v16, %v3132_v13  ;;  %v3629_v33 = vor.u32 %v4244_v23, %v3628_v21 }
  0xc7   : > { %2160 = vmatpush.bf16.msra.mxu2 %v3197_v30  ;;  %v3884_v29 = vld [vmem:[#allocation4 + $0x7e8] sm:$0xf]  ;;  %v4308_v30 = vld [vmem:[#allocation4 + $0x7f4] sm:$0xf0] }
  0xc8   : > { %2173 = vmatpush.bf16.msra.mxu3 %v3325_v35  ;;  %v3757_v35 = vor.u32 %v4276_v26, %v3756_v24  ;;  %v3484_v36 = vld [vmem:[#allocation4 + $0x4c8] sm:$0xf]  ;;  %v4208_v39 = vld [vmem:[#allocation4 + $0x4d4] sm:$0xf0]  ;;  %v3885_v42 = vor.u32 %v4308_v30, %v3884_v29 }
  0xc9   : > { %v3612_v41 = vld [vmem:[#allocation4 + $0x5c8] sm:$0xf]  ;;  %v4240_v43 = vld [vmem:[#allocation4 + $0x5d4] sm:$0xf0]  ;;  %v3485_v48 = vor.u32 %v4208_v39, %v3484_v36 }
  0xca   : > { %2135 = vmatpush.bf16.msra.mxu0 %v2925_v44  ;;  %2148 = vmatpush.bf16.msra.mxu1 %v3053_v45  ;;  %v3740_v44 = vld [vmem:[#allocation4 + $0x6c8] sm:$0xf]  ;;  %v4272_v45 = vld [vmem:[#allocation4 + $0x6d4] sm:$0xf0]  ;;  %v3613_v49 = vor.u32 %v4240_v43, %v3612_v41 }
  0xcb   : > { %2161 = vmatpush.bf16.msra.mxu2 %v3181_v46  ;;  %v3868_v46 = vld [vmem:[#allocation4 + $0x7c8] sm:$0xf]  ;;  %v4304_v47 = vld [vmem:[#allocation4 + $0x7d4] sm:$0xf0] }
  0xcc   : > { %2174 = vmatpush.bf16.msra.mxu3 %v3309_v50  ;;  %v3741_v50 = vor.u32 %v4272_v45, %v3740_v44  ;;  %v3468_v51 = vld [vmem:[#allocation4 + $0x4a8] sm:$0xf]  ;;  %v4204_v52 = vld [vmem:[#allocation4 + $0x4b4] sm:$0xf0]  ;;  %v3869_v54 = vor.u32 %v4304_v47, %v3868_v46 }
  0xcd   : > { %v3596_v53 = vld [vmem:[#allocation4 + $0x5a8] sm:$0xf]  ;;  %v4236_v55 = vld [vmem:[#allocation4 + $0x5b4] sm:$0xf0]  ;;  %v3469_v60 = vor.u32 %v4204_v52, %v3468_v51 }
  0xce   : > { %2136 = vmatpush.bf16.msra.mxu0 %v2909_v56  ;;  %2149 = vmatpush.bf16.msra.mxu1 %v3037_v57  ;;  %v3724_v56 = vld [vmem:[#allocation4 + $0x6a8] sm:$0xf]  ;;  %v4268_v57 = vld [vmem:[#allocation4 + $0x6b4] sm:$0xf0] }
  0xcf   : > { %2162 = vmatpush.bf16.msra.mxu2 %v3165_v58  ;;  %v3852_v58 = vld [vmem:[#allocation4 + $0x7a8] sm:$0xf]  ;;  %v4300_v59 = vld [vmem:[#allocation4 + $0x7b4] sm:$0xf0]  ;;  %v3725_v63 = vor.u32 %v4268_v57, %v3724_v56 }
  0xd0   : > { %2175 = vmatpush.bf16.msra.mxu3 %v3293_v62  ;;  %v3452_v61 = vld [vmem:[#allocation4 + $0x488] sm:$0xf]  ;;  %v3597_v62 = vor.u32 %v4236_v55, %v3596_v53  ;;  %v4200_v0 = vld [vmem:[#allocation4 + $0x494] sm:$0xf0]  ;;  %v3853_v3 = vor.u32 %v4300_v59, %v3852_v58 }
  0xd1   : > { %v3580_v1 = vld [vmem:[#allocation4 + $0x588] sm:$0xf]  ;;  %v4232_v2 = vld [vmem:[#allocation4 + $0x594] sm:$0xf0]  ;;  %v3453_v11 = vor.u32 %v4200_v0, %v3452_v61 }
  0xd2   : > { %2137 = vmatpush.bf16.msra.mxu0 %v2893_v4  ;;  %2150 = vmatpush.bf16.msra.mxu1 %v3021_v7  ;;  %v3708_v4 = vld [vmem:[#allocation4 + $0x688] sm:$0xf]  ;;  %v4264_v5 = vld [vmem:[#allocation4 + $0x694] sm:$0xf0]  ;;  %v3581_v13 = vor.u32 %v4232_v2, %v3580_v1 }
  0xd3   : > { %2163 = vmatpush.bf16.msra.mxu2 %v3149_v10  ;;  %v3836_v7 = vld [vmem:[#allocation4 + $0x788] sm:$0xf]  ;;  %v4296_v10 = vld [vmem:[#allocation4 + $0x794] sm:$0xf0] }
  0xd4   : > { %2176 = vmatpush.bf16.msra.mxu3 %v3277_v14  ;;  %v3436_v12 = vld [vmem:[#allocation4 + $0x468] sm:$0xf]  ;;  %v3709_v14 = vor.u32 %v4264_v5, %v3708_v4  ;;  %v4196_v16 = vld [vmem:[#allocation4 + $0x474] sm:$0xf0]  ;;  %v3837_v19 = vor.u32 %v4296_v10, %v3836_v7 }
  0xd5   : > { %v3564_v17 = vld [vmem:[#allocation4 + $0x568] sm:$0xf]  ;;  %v4228_v20 = vld [vmem:[#allocation4 + $0x574] sm:$0xf0]  ;;  %v3437_v26 = vor.u32 %v4196_v16, %v3436_v12  ;;  %v1945_v45 = vpop.f32.mrf.mxu1  ;;  %v2990_v16 = vld [vmem:[#allocation4 + $0xf8] sm:$0xf0] }
  0xd6   : > { %2138 = vmatpush.bf16.msra.mxu0 %v2877_v22  ;;  %2151 = vmatpush.bf16.msra.mxu1 %v3005_v27  ;;  %v3692_v21 = vld [vmem:[#allocation4 + $0x668] sm:$0xf]  ;;  %v4260_v22 = vld [vmem:[#allocation4 + $0x674] sm:$0xf0] }
  0xd7   : > { %2164 = vmatpush.bf16.msra.mxu2 %v3133_v28  ;;  %v3820_v23 = vld [vmem:[#allocation4 + $0x768] sm:$0xf]  ;;  %v4292_v24 = vld [vmem:[#allocation4 + $0x774] sm:$0xf0]  ;;  %v3565_v28 = vor.u32 %v4228_v20, %v3564_v17  ;;  %v3693_v29 = vor.u32 %v4260_v22, %v3692_v21  ;;  %v4114_v17 = vld [vmem:[#allocation4 + $0x1ec] sm:$0xf] }
  0xd8   : > { %2177 = vmatpush.bf16.msra.mxu3 %v3261_v31  ;;  %v3420_v30 = vld [vmem:[#allocation4 + $0x448] sm:$0xf]  ;;  %v4192_v31 = vld [vmem:[#allocation4 + $0x454] sm:$0xf0]  ;;  %v4146_v20 = vld [vmem:[#allocation4 + $0x2ec] sm:$0xf] }
  0xd9   : > { %2139 = vmatmul.bf16.vlgmr.msra.gmra.mxu0 %v4798_v9  ;;  %2152 = vmatmul.bf16.vlgmr.msra.gmra.mxu1 %v4807_v25  ;;  %v4224_v36 = vld [vmem:[#allocation4 + $0x554] sm:$0xf0]  ;;  %v3676_v39 = vld [vmem:[#allocation4 + $0x648] sm:$0xf]  ;;  %v3421_v44 = vor.u32 %v4192_v31, %v3420_v30  ;;  %v3246_v21 = vld [vmem:[#allocation4 + $0x2f8] sm:$0xf0] }
  0xda   : > { %2183 = vmatpush.bf16.msrb.mxu0 %v3501_v32  ;;  %2196 = vmatpush.bf16.msrb.mxu1 %v3629_v33  ;;  %v3548_v32 = vld [vmem:[#allocation4 + $0x548] sm:$0xf]  ;;  %v4256_v41 = vld [vmem:[#allocation4 + $0x654] sm:$0xf0] }
  0xdb   : > { %2209 = vmatpush.bf16.msrb.mxu2 %v3757_v35  ;;  %2178 = vmatmul.bf16.vlgmr.msra.gmra.mxu3 %v4801_v15  ;;  %v3821_v35 = vor.u32 %v4292_v24, %v3820_v23  ;;  %v4288_v43 = vld [vmem:[#allocation4 + $0x754] sm:$0xf0]  ;;  %v3549_v46 = vor.u32 %v4224_v36, %v3548_v32  ;;  %v3677_v47 = vor.u32 %v4256_v41, %v3676_v39  ;;  %v3788_v57 = vld [vmem:[#allocation4 + $0x728] sm:$0xf]  ;;  %v4110_v36 = vld [vmem:[#allocation4 + $0x1cc] sm:$0xf] }
  0xdc   : > { %2222 = vmatpush.bf16.msrb.mxu3 %v3885_v42  ;;  %2165 = vmatmul.bf16.vlgmr.msra.gmra.mxu2 %v4796_v8  ;;  %v3804_v42 = vld [vmem:[#allocation4 + $0x748] sm:$0xf]  ;;  %v4220_v53 = vld [vmem:[#allocation4 + $0x534] sm:$0xf0]  ;;  %v3249_v32 = vor.u32 %v4146_v20, %v3246_v21 }
  0xdd   : > { %v3805_v52 = vor.u32 %v4288_v43, %v3804_v42  ;;  %v4252_v55 = vld [vmem:[#allocation4 + $0x634] sm:$0xf0]  ;;  %v3644_v5 = vld [vmem:[#allocation4 + $0x608] sm:$0xf]  ;;  %v1947_v22 = vpop.f32.mrf.mxu1  ;;  %v3102_v42 = vld [vmem:[#allocation4 + $0x1d8] sm:$0xf0] }
  0xde   : > { %2184 = vmatpush.bf16.msrb.mxu0 %v3485_v48  ;;  %2197 = vmatpush.bf16.msrb.mxu1 %v3613_v49  ;;  %v3404_v48 = vld [vmem:[#allocation4 + $0x428] sm:$0xf]  ;;  %v4188_v49 = vld [vmem:[#allocation4 + $0x434] sm:$0xf0]  ;;  %v4142_v43 = vld [vmem:[#allocation4 + $0x2cc] sm:$0xf] }
  0xdf   : > { %2210 = vmatpush.bf16.msrb.mxu2 %v3741_v50  ;;  %v3532_v50 = vld [vmem:[#allocation4 + $0x528] sm:$0xf]  ;;  %v4284_v58 = vld [vmem:[#allocation4 + $0x734] sm:$0xf0]  ;;  %v3405_v61 = vor.u32 %v4188_v49, %v3404_v48  ;;  %v3105_v48 = vor.u32 %v4110_v36, %v3102_v42  ;;  %v3054_v22 = vld [vmem:[#allocation4 + $0x178] sm:$0xf0] }
  0xe0   : > { %2223 = vmatpush.bf16.msrb.mxu3 %v3869_v54  ;;  %v3660_v54 = vld [vmem:[#allocation4 + $0x628] sm:$0xf]  ;;  %v3533_v1 = vor.u32 %v4220_v53, %v3532_v50  ;;  %v4216_v4 = vld [vmem:[#allocation4 + $0x514] sm:$0xf0]  ;;  %v3789_v10 = vor.u32 %v4284_v58, %v3788_v57  ;;  %v4074_v50 = vld [vmem:[#allocation4 + $0xac] sm:$0xf] }
  0xe1   : > { %v3661_v2 = vor.u32 %v4252_v55, %v3660_v54  ;;  %v3772_v12 = vld [vmem:[#allocation4 + $0x708] sm:$0xf]  ;;  %v3086_v54 = vld [vmem:[#allocation4 + $0x1b8] sm:$0xf0]  ;;  %v4138_v55 = vld [vmem:[#allocation4 + $0x2ac] sm:$0xf] }
  0xe2   : > { %2185 = vmatpush.bf16.msrb.mxu0 %v3469_v60  ;;  %2198 = vmatpush.bf16.msrb.mxu1 %v3597_v62  ;;  %v1932_v27 = vpop.f32.mrf.mxu0  ;;  %v1971_v60 = vpop.f32.mrf.mxu3  ;;  %v3388_v62 = vld [vmem:[#allocation4 + $0x408] sm:$0xf]  ;;  %v4170_v57 = vld [vmem:[#allocation4 + $0x3ac] sm:$0xf]  ;;  %v3342_v58 = vld [vmem:[#allocation4 + $0x3b8] sm:$0xf0] }
  0xe3   : > { %2211 = vmatpush.bf16.msrb.mxu2 %v3725_v63  ;;  %v1933_v33 = vadd.f32 %v1932_v27, %v635_v18  ;;  %v4184_v63 = vld [vmem:[#allocation4 + $0x414] sm:$0xf0]  ;;  %v3374_v27 = vld [vmem:[#allocation4 + $0x3f8] sm:$0xf0] }
  0xe4   : > { %2224 = vmatpush.bf16.msrb.mxu3 %v3853_v3  ;;  %v3516_v3 = vld [vmem:[#allocation4 + $0x508] sm:$0xf]  ;;  %v3389_v18 = vor.u32 %v4184_v63, %v3388_v62  ;;  %v4070_v62 = vld [vmem:[#allocation4 + $0x8c] sm:$0xf]  ;;  %v2942_v63 = vld [vmem:[#allocation4 + $0x98] sm:$0xf0] }
  0xe5   : > { %v1946_v51 = vadd.f32 %v1945_v45, %v1933_v33  ;;  %v3517_v23 = vor.u32 %v4216_v4, %v3516_v3  ;;  %v4078_v33 = vld [vmem:[#allocation4 + $0xcc] sm:$0xf]  ;;  %v3198_v4 = vld [vmem:[#allocation4 + $0x298] sm:$0xf0] }
  0xe6   : > { %2186 = vmatpush.bf16.msrb.mxu0 %v3453_v11  ;;  %2199 = vmatpush.bf16.msrb.mxu1 %v3581_v13  ;;  %v4248_v11 = vld [vmem:[#allocation4 + $0x614] sm:$0xf0]  ;;  %v4174_v45 = vld [vmem:[#allocation4 + $0x3cc] sm:$0xf]  ;;  %v3166_v42 = vld [vmem:[#allocation4 + $0x258] sm:$0xf0] }
  0xe7   : > { %2212 = vmatpush.bf16.msrb.mxu2 %v3709_v14  ;;  %v1958_v56 = vpop.f32.mrf.mxu2  ;;  %v4280_v13 = vld [vmem:[#allocation4 + $0x714] sm:$0xf0]  ;;  %v4082_v14 = vld [vmem:[#allocation4 + $0xec] sm:$0xf]  ;;  %v3645_v24 = vor.u32 %v4248_v11, %v3644_v5  ;;  %v2945_v11 = vor.u32 %v4070_v62, %v2942_v63 }
  0xe8   : > { %2225 = vmatpush.bf16.msrb.mxu3 %v3837_v19  ;;  %v1959_v59 = vadd.f32 %v1958_v56, %v1946_v51  ;;  %v3118_v19 = vld [vmem:[#allocation4 + $0x1f8] sm:$0xf0]  ;;  %v4134_v3 = vld [vmem:[#allocation4 + $0x28c] sm:$0xf] }
  0xe9   : > { %v3121_v31 = vor.u32 %v4114_v17, %v3118_v19  ;;  %v2958_v51 = vld [vmem:[#allocation4 + $0xb8] sm:$0xf0]  ;;  %v4166_v5 = vld [vmem:[#allocation4 + $0x38c] sm:$0xf] }
  0xea   : > { %2187 = vmatpush.bf16.msrb.mxu0 %v3437_v26  ;;  %2200 = vmatpush.bf16.msrb.mxu1 %v3565_v28  ;;  %v1934_v0 = vpop.f32.mrf.mxu0  ;;  %v4841_v7 = vadd.f32 %v1971_v60, %v1959_v59  ;;  %v4178_v26 = vld [vmem:[#allocation4 + $0x3ec] sm:$0xf]  ;;  %v3773_v28 = vor.u32 %v4280_v13, %v3772_v12  ;;  %v1973_v39 = vpop.f32.mrf.mxu3  ;;  %v3214_v56 = vld [vmem:[#allocation4 + $0x2b8] sm:$0xf0]  ;;  %v2961_v59 = vor.u32 %v4074_v50, %v2958_v51 }
  0xeb   : > { %2213 = vmatpush.bf16.msrb.mxu2 %v3693_v29  ;;  %v2993_v29 = vor.u32 %v4082_v14, %v2990_v16  ;;  %v3377_v41 = vor.u32 %v4178_v26, %v3374_v27  ;;  %v4102_v0 = vld [vmem:[#allocation4 + $0x18c] sm:$0xf]  ;;  %v3201_v14 = vor.u32 %v4134_v3, %v3198_v4  ;;  %v2926_v17 = vld [vmem:[#allocation4 + $0x78] sm:$0xf0] }
  0xec   : > { %2226 = vmatpush.bf16.msrb.mxu3 %v3821_v35  ;;  %v2974_v35 = vld [vmem:[#allocation4 + $0xd8] sm:$0xf0]  ;;  %v4066_v16 = vld [vmem:[#allocation4 + $0x6c] sm:$0xf] }
  0xed   : > { %v4162_v26 = vld [vmem:[#allocation4 + $0x36c] sm:$0xf]  ;;  %v3310_v27 = vld [vmem:[#allocation4 + $0x378] sm:$0xf0] }
  0xee   : > { %2188 = vmatpush.bf16.msrb.mxu0 %v3421_v44  ;;  %2201 = vmatpush.bf16.msrb.mxu1 %v3549_v46  ;;  %v3230_v44 = vld [vmem:[#allocation4 + $0x2d8] sm:$0xf0]  ;;  %v4054_v63 = vld [vmem:[#allocation4 + $0xc] sm:$0xf] }
  0xef   : > { %2214 = vmatpush.bf16.msrb.mxu2 %v3677_v47  ;;  %v1960_v30 = vpop.f32.mrf.mxu2  ;;  %v3358_v46 = vld [vmem:[#allocation4 + $0x3d8] sm:$0xf0]  ;;  %v2977_v47 = vor.u32 %v4078_v33, %v2974_v35  ;;  %v3233_v49 = vor.u32 %v4142_v43, %v3230_v44  ;;  %v4094_v35 = vld [vmem:[#allocation4 + $0x14c] sm:$0xf] }
  0xf0   : > { %2227 = vmatpush.bf16.msrb.mxu3 %v3805_v52  ;;  %v4106_v52 = vld [vmem:[#allocation4 + $0x1ac] sm:$0xf]  ;;  %v3361_v53 = vor.u32 %v4174_v45, %v3358_v46  ;;  %v2910_v33 = vld [vmem:[#allocation4 + $0x58] sm:$0xf0] }
  0xf1   : > { %v3089_v60 = vor.u32 %v4106_v52, %v3086_v54  ;;  %v3038_v39 = vld [vmem:[#allocation4 + $0x158] sm:$0xf0]  ;;  %v4158_v45 = vld [vmem:[#allocation4 + $0x34c] sm:$0xf] }
  0xf2   : > { %2189 = vmatpush.bf16.msrb.mxu0 %v3405_v61  ;;  %2202 = vmatpush.bf16.msrb.mxu1 %v3533_v1  ;;  %v3217_v61 = vor.u32 %v4138_v55, %v3214_v56  ;;  %v3345_v1 = vor.u32 %v4170_v57, %v3342_v58  ;;  %v3294_v46 = vld [vmem:[#allocation4 + $0x358] sm:$0xf0]  ;;  %v3041_v50 = vor.u32 %v4094_v35, %v3038_v39  ;;  %v4058_v52 = vld [vmem:[#allocation4 + $0x2c] sm:$0xf] }
  0xf3   : > { %2215 = vmatpush.bf16.msrb.mxu2 %v3661_v2  ;;  %v3070_v2 = vld [vmem:[#allocation4 + $0x198] sm:$0xf0]  ;;  %v4090_v54 = vld [vmem:[#allocation4 + $0x12c] sm:$0xf]  ;;  %v3297_v56 = vor.u32 %v4158_v45, %v3294_v46 }
  0xf4   : > { %2228 = vmatpush.bf16.msrb.mxu3 %v3789_v10  ;;  %v3326_v10 = vld [vmem:[#allocation4 + $0x398] sm:$0xf0]  ;;  %v3073_v13 = vor.u32 %v4102_v0, %v3070_v2  ;;  %v4122_v58 = vld [vmem:[#allocation4 + $0x22c] sm:$0xf] }
  0xf5   : > { %v3329_v21 = vor.u32 %v4166_v5, %v3326_v10  ;;  %v3022_v57 = vld [vmem:[#allocation4 + $0x138] sm:$0xf0]  ;;  %v4086_v3 = vld [vmem:[#allocation4 + $0x10c] sm:$0xf] }
  0xf6   : > { %2190 = vmatpush.bf16.msrb.mxu0 %v3389_v18  ;;  %2203 = vmatpush.bf16.msrb.mxu1 %v3517_v23  ;;  %v1984_v12 = vpop.f32.mrf.mxu0  ;;  %v4098_v18 = vld [vmem:[#allocation4 + $0x16c] sm:$0xf]  ;;  %v1997_v20 = vpop.f32.mrf.mxu1  ;;  %v2878_v0 = vld [vmem:[#allocation4 + $0x18] sm:$0xf0] }
  0xf7   : > { %2216 = vmatpush.bf16.msrb.mxu2 %v3645_v24  ;;  %v1985_v19 = vadd.f32 %v1984_v12, %v4841_v7  ;;  %v4130_v23 = vld [vmem:[#allocation4 + $0x26c] sm:$0xf]  ;;  %v3182_v24 = vld [vmem:[#allocation4 + $0x278] sm:$0xf0]  ;;  %v3057_v30 = vor.u32 %v4098_v18, %v3054_v22  ;;  %v3313_v7 = vor.u32 %v4162_v26, %v3310_v27 }
  0xf8   : > { %2229 = vmatpush.bf16.msrb.mxu3 %v3773_v28  ;;  %v3006_v4 = vld [vmem:[#allocation4 + $0x118] sm:$0xf0]  ;;  %v4118_v5 = vld [vmem:[#allocation4 + $0x20c] sm:$0xf] }
  0xf9   : > { %2191 = vmatmul.bf16.vlgmr.msrb.gmra.mxu0 %v4816_v37  ;;  %2204 = vmatmul.bf16.vlgmr.msrb.gmra.mxu1 %v4820_v40  ;;  %v1998_v28 = vadd.f32 %v1997_v20, %v1985_v19  ;;  %v3134_v12 = vld [vmem:[#allocation4 + $0x218] sm:$0xf0]  ;;  %v4242_v19 = vld [vmem:[#allocation4 + $0x5ec] sm:$0xf]  ;;  %v2881_v20 = vor.u32 %v4054_v63, %v2878_v0 }
  0xfa   : > { %2235 = vmatpush.bf16.msra.mxu0 %v2993_v29  ;;  %2248 = vmatpush.bf16.msra.mxu1 %v3121_v31  ;;  %v2929_v29 = vor.u32 %v4066_v16, %v2926_v17  ;;  %v3185_v31 = vor.u32 %v4130_v23, %v3182_v24  ;;  %v4210_v17 = vld [vmem:[#allocation4 + $0x4ec] sm:$0xf]  ;;  %v3502_v18 = vld [vmem:[#allocation4 + $0x4f8] sm:$0xf0]  ;;  %v3009_v24 = vor.u32 %v4086_v3, %v3006_v4 }
  0xfb   : > { %2261 = vmatpush.bf16.msra.mxu2 %v3249_v32  ;;  %2230 = vmatmul.bf16.vlgmr.msrb.gmra.mxu3 %v4818_v38  ;;  %v4062_v32 = vld [vmem:[#allocation4 + $0x4c] sm:$0xf]  ;;  %v3758_v23 = vld [vmem:[#allocation4 + $0x6f8] sm:$0xf0]  ;;  %v3137_v26 = vor.u32 %v4118_v5, %v3134_v12 }
  0xfc   : > { %2274 = vmatpush.bf16.msra.mxu3 %v3377_v41  ;;  %2217 = vmatmul.bf16.vlgmr.msrb.gmra.mxu2 %v4814_v34  ;;  %v4126_v41 = vld [vmem:[#allocation4 + $0x24c] sm:$0xf]  ;;  %v3486_v35 = vld [vmem:[#allocation4 + $0x4d8] sm:$0xf0] }
  0xfd   : > { %v3169_v51 = vor.u32 %v4126_v41, %v3166_v42  ;;  %v4274_v22 = vld [vmem:[#allocation4 + $0x6ec] sm:$0xf]  ;;  %v3614_v39 = vld [vmem:[#allocation4 + $0x5d8] sm:$0xf0] }
  0xfe   : > { %2236 = vmatpush.bf16.msra.mxu0 %v2977_v47  ;;  %2249 = vmatpush.bf16.msra.mxu1 %v3105_v48  ;;  %v2023_v44 = vpop.f32.mrf.mxu3  ;;  %v2913_v47 = vor.u32 %v4062_v32, %v2910_v33  ;;  %v1999_v55 = vpop.f32.mrf.mxu1  ;;  %v4306_v27 = vld [vmem:[#allocation4 + $0x7ec] sm:$0xf]  ;;  %v3761_v32 = vor.u32 %v4274_v22, %v3758_v23  ;;  %v3742_v42 = vld [vmem:[#allocation4 + $0x6d8] sm:$0xf0] }
  0xff   : > { %2262 = vmatpush.bf16.msra.mxu2 %v3233_v49  ;;  %v2010_v36 = vpop.f32.mrf.mxu2  ;;  %v1986_v49 = vpop.f32.mrf.mxu0  ;;  %v4206_v33 = vld [vmem:[#allocation4 + $0x4cc] sm:$0xf]  ;;  %v3726_v55 = vld [vmem:[#allocation4 + $0x6b8] sm:$0xf0] }
 0x100   : > { %2275 = vmatpush.bf16.msra.mxu3 %v3361_v53  ;;  %v2011_v43 = vadd.f32 %v2010_v36, %v1998_v28  ;;  %v2894_v53 = vld [vmem:[#allocation4 + $0x38] sm:$0xf0]  ;;  %v4238_v36 = vld [vmem:[#allocation4 + $0x5cc] sm:$0xf]  ;;  %v3489_v45 = vor.u32 %v4206_v33, %v3486_v35 }
 0x101   : > { %v2897_v62 = vor.u32 %v4058_v52, %v2894_v53  ;;  %v3886_v28 = vld [vmem:[#allocation4 + $0x7f8] sm:$0xf0]  ;;  %v4270_v41 = vld [vmem:[#allocation4 + $0x6cc] sm:$0xf]  ;;  %v3617_v46 = vor.u32 %v4238_v36, %v3614_v39 }
 0x102   : > { %2237 = vmatpush.bf16.msra.mxu0 %v2961_v59  ;;  %2250 = vmatpush.bf16.msra.mxu1 %v3089_v60  ;;  %v4848_v48 = vadd.f32 %v2023_v44, %v2011_v43  ;;  %v3150_v59 = vld [vmem:[#allocation4 + $0x238] sm:$0xf0]  ;;  %v4154_v60 = vld [vmem:[#allocation4 + $0x32c] sm:$0xf] }
 0x103   : > { %2263 = vmatpush.bf16.msra.mxu2 %v3217_v61  ;;  %v3278_v61 = vld [vmem:[#allocation4 + $0x338] sm:$0xf0]  ;;  %v3153_v2 = vor.u32 %v4122_v58, %v3150_v59  ;;  %v4302_v43 = vld [vmem:[#allocation4 + $0x7cc] sm:$0xf] }
 0x104   : > { %2276 = vmatpush.bf16.msra.mxu3 %v3345_v1  ;;  %v3025_v1 = vor.u32 %v4090_v54, %v3022_v57  ;;  %v3870_v44 = vld [vmem:[#allocation4 + $0x7d8] sm:$0xf0]  ;;  %v4202_v49 = vld [vmem:[#allocation4 + $0x4ac] sm:$0xf] }
 0x105   : > { %v3873_v52 = vor.u32 %v4302_v43, %v3870_v44  ;;  %v3598_v53 = vld [vmem:[#allocation4 + $0x5b8] sm:$0xf0]  ;;  %v4266_v54 = vld [vmem:[#allocation4 + $0x6ac] sm:$0xf] }
 0x106   : > { %2238 = vmatpush.bf16.msra.mxu0 %v2945_v11  ;;  %2251 = vmatpush.bf16.msra.mxu1 %v3073_v13  ;;  %v3281_v11 = vor.u32 %v4154_v60, %v3278_v61  ;;  %v4150_v13 = vld [vmem:[#allocation4 + $0x30c] sm:$0xf]  ;;  %v2025_v16 = vpop.f32.mrf.mxu3  ;;  %v3854_v57 = vld [vmem:[#allocation4 + $0x7b8] sm:$0xf0]  ;;  %v3729_v60 = vor.u32 %v4266_v54, %v3726_v55  ;;  %v636_v54 = vperm.slane %v4838_v6, 1 }
 0x107   : > { %2264 = vmatpush.bf16.msra.mxu2 %v3201_v14  ;;  %v2012_v10 = vpop.f32.mrf.mxu2  ;;  %v3262_v14 = vld [vmem:[#allocation4 + $0x318] sm:$0xf0]  ;;  %v4198_v61 = vld [vmem:[#allocation4 + $0x48c] sm:$0xf] }
 0x108   : > { %2277 = vmatpush.bf16.msra.mxu3 %v3329_v21  ;;  %v3630_v21 = vld [vmem:[#allocation4 + $0x5f8] sm:$0xf0]  ;;  %v4294_v3 = vld [vmem:[#allocation4 + $0x78c] sm:$0xf] }
 0x109   : > { %v3582_v0 = vld [vmem:[#allocation4 + $0x598] sm:$0xf0]  ;;  %v4194_v10 = vld [vmem:[#allocation4 + $0x46c] sm:$0xf] }
 0x10a   : > { %2239 = vmatpush.bf16.msra.mxu0 %v2929_v29  ;;  %2252 = vmatpush.bf16.msra.mxu1 %v3057_v30  ;;  %v3265_v29 = vor.u32 %v4150_v13, %v3262_v14  ;;  %v3505_v30 = vor.u32 %v4210_v17, %v3502_v18  ;;  %v4226_v12 = vld [vmem:[#allocation4 + $0x56c] sm:$0xf]  ;;  %v3566_v16 = vld [vmem:[#allocation4 + $0x578] sm:$0xf0] }
 0x10b   : > { %2265 = vmatpush.bf16.msra.mxu2 %v3185_v31  ;;  %v3633_v31 = vor.u32 %v4242_v19, %v3630_v21  ;;  %v4258_v17 = vld [vmem:[#allocation4 + $0x66c] sm:$0xf]  ;;  %v3694_v18 = vld [vmem:[#allocation4 + $0x678] sm:$0xf0]  ;;  %v3569_v22 = vor.u32 %v4226_v12, %v3566_v16  ;;  %v4315_v16 = vld [vmem:[#allocation7 + $0x30] sm:$0xff] }
 0x10c   : > { %2278 = vmatpush.bf16.msra.mxu3 %v3313_v7  ;;  %v3889_v7 = vor.u32 %v4306_v27, %v3886_v28  ;;  %v4290_v19 = vld [vmem:[#allocation4 + $0x76c] sm:$0xf]  ;;  %v3697_v23 = vor.u32 %v4258_v17, %v3694_v18  ;;  %v3806_v36 = vld [vmem:[#allocation4 + $0x758] sm:$0xf0] }
 0x10d   : > { %v4222_v27 = vld [vmem:[#allocation4 + $0x54c] sm:$0xf]  ;;  %v3406_v44 = vld [vmem:[#allocation4 + $0x438] sm:$0xf0] }
 0x10e   : > { %2240 = vmatpush.bf16.msra.mxu0 %v2913_v47  ;;  %2253 = vmatpush.bf16.msra.mxu1 %v3041_v50  ;;  %v3745_v47 = vor.u32 %v4270_v41, %v3742_v42  ;;  %v3470_v50 = vld [vmem:[#allocation4 + $0x4b8] sm:$0xf0]  ;;  %v4286_v35 = vld [vmem:[#allocation4 + $0x74c] sm:$0xf] }
 0x10f   : > { %2266 = vmatpush.bf16.msra.mxu2 %v3169_v51  ;;  %v4234_v51 = vld [vmem:[#allocation4 + $0x5ac] sm:$0xf]  ;;  %v3473_v58 = vor.u32 %v4202_v49, %v3470_v50  ;;  %v3534_v49 = vld [vmem:[#allocation4 + $0x538] sm:$0xf0] }
 0x110   : > { %2279 = vmatpush.bf16.msra.mxu3 %v3297_v56  ;;  %v4298_v56 = vld [vmem:[#allocation4 + $0x7ac] sm:$0xf]  ;;  %v3601_v59 = vor.u32 %v4234_v51, %v3598_v53  ;;  %v3662_v51 = vld [vmem:[#allocation4 + $0x638] sm:$0xf0] }
 0x111   : > { %v3857_v63 = vor.u32 %v4298_v56, %v3854_v57  ;;  %v4186_v43 = vld [vmem:[#allocation4 + $0x42c] sm:$0xf]  ;;  %v3790_v53 = vld [vmem:[#allocation4 + $0x738] sm:$0xf0] }
 0x112   : > { %2241 = vmatpush.bf16.msra.mxu0 %v2897_v62  ;;  %2254 = vmatpush.bf16.msra.mxu1 %v3025_v1  ;;  %v3454_v62 = vld [vmem:[#allocation4 + $0x498] sm:$0xf0]  ;;  %v4262_v1 = vld [vmem:[#allocation4 + $0x68c] sm:$0xf]  ;;  %v3409_v55 = vor.u32 %v4186_v43, %v3406_v44 }
 0x113   : > { %2267 = vmatpush.bf16.msra.mxu2 %v3153_v2  ;;  %v3710_v2 = vld [vmem:[#allocation4 + $0x698] sm:$0xf0]  ;;  %v4250_v50 = vld [vmem:[#allocation4 + $0x62c] sm:$0xf] }
 0x114   : > { %2280 = vmatpush.bf16.msra.mxu3 %v3281_v11  ;;  %v3713_v5 = vor.u32 %v4262_v1, %v3710_v2  ;;  %v3438_v11 = vld [vmem:[#allocation4 + $0x478] sm:$0xf0]  ;;  %v3665_v57 = vor.u32 %v4250_v50, %v3662_v51  ;;  %v4278_v2 = vld [vmem:[#allocation4 + $0x70c] sm:$0xf] }
 0x115   : > { %v3441_v21 = vor.u32 %v4194_v10, %v3438_v11  ;;  %v4316_v11 = vld [vmem:[#allocation7 + $0x38] sm:$0xff] }
 0x116   : > { %2242 = vmatpush.bf16.msra.mxu0 %v2881_v20  ;;  %2255 = vmatpush.bf16.msra.mxu1 %v3009_v24  ;;  %v4854_v4 = vpop.f32.mrf.mxu0  ;;  %v4856_v13 = vpop.f32.mrf.mxu1  ;;  %v3822_v20 = vld [vmem:[#allocation4 + $0x778] sm:$0xf0]  ;;  %v4190_v24 = vld [vmem:[#allocation4 + $0x44c] sm:$0xf] }
 0x117   : > { %2268 = vmatpush.bf16.msra.mxu2 %v3137_v26  ;;  %v3422_v26 = vld [vmem:[#allocation4 + $0x458] sm:$0xf0] }
 0x118   : > { %2281 = vmatpush.bf16.msra.mxu3 %v3265_v29  ;;  %v3825_v29 = vor.u32 %v4290_v19, %v3822_v20  ;;  %v4324_v12 = vld [vmem:[#allocation7 + $0x78] sm:$0xff]  ;;  %v4322_v20 = vld [vmem:[#allocation7 + $0x68] sm:$0xff] }
 0x119   : > { %2243 = vmatmul.bf16.vlgmr.msra.gmra.mxu0 %v4798_v9  ;;  %2256 = vmatmul.bf16.vlgmr.msra.gmra.mxu1 %v4807_v25  ;;  %v3838_v9 = vld [vmem:[#allocation4 + $0x798] sm:$0xf0] }
 0x11a   : > { %2287 = vmatpush.bf16.msrb.mxu0 %v3505_v30  ;;  %2300 = vmatpush.bf16.msrb.mxu1 %v3633_v31  ;;  %v3841_v14 = vor.u32 %v4294_v3, %v3838_v9  ;;  %v3550_v30 = vld [vmem:[#allocation4 + $0x558] sm:$0xf0]  ;;  %v4254_v31 = vld [vmem:[#allocation4 + $0x64c] sm:$0xf]  ;;  %v2037_v9 = vadd.f32 %v4854_v4, %v636_v54  ;;  %v4323_v4 = vld [vmem:[#allocation7 + $0x70] sm:$0xff] }
 0x11b   : > { %2313 = vmatpush.bf16.msrb.mxu2 %v3761_v32  ;;  %2282 = vmatmul.bf16.vlgmr.msra.gmra.mxu3 %v4801_v15  ;;  %v3457_v15 = vor.u32 %v4198_v61, %v3454_v62  ;;  %v3678_v32 = vld [vmem:[#allocation4 + $0x658] sm:$0xf0]  ;;  %v3553_v41 = vor.u32 %v4222_v27, %v3550_v30  ;;  %v4311_v30 = vld [vmem:[#allocation7 + $0x10] sm:$0xff] }
 0x11c   : > { %2326 = vmatpush.bf16.msrb.mxu3 %v3889_v7  ;;  %2269 = vmatmul.bf16.vlgmr.msra.gmra.mxu2 %v4796_v8  ;;  %v4230_v8 = vld [vmem:[#allocation4 + $0x58c] sm:$0xf]  ;;  %v3425_v7 = vor.u32 %v4190_v24, %v3422_v26  ;;  %v3681_v42 = vor.u32 %v4254_v31, %v3678_v32  ;;  %v3774_v3 = vld [vmem:[#allocation4 + $0x718] sm:$0xf0]  ;;  %v4331_v26 = vld [vmem:[#allocation7 + $0xb0] sm:$0xff] }
 0x11d   : > { %v3585_v25 = vor.u32 %v4230_v8, %v3582_v0  ;;  %v3518_v8 = vld [vmem:[#allocation4 + $0x518] sm:$0xf0]  ;;  %v3777_v10 = vor.u32 %v4278_v2, %v3774_v3  ;;  %v4327_v54 = vld [vmem:[#allocation7 + $0x90] sm:$0xff] }
 0x11e   : > { %2288 = vmatpush.bf16.msrb.mxu0 %v3489_v45  ;;  %2301 = vmatpush.bf16.msrb.mxu1 %v3617_v46  ;;  %v4860_v33 = vpop.f32.mrf.mxu3  ;;  %v2038_v39 = vpop.f32.mrf.mxu0  ;;  %v4218_v45 = vld [vmem:[#allocation4 + $0x52c] sm:$0xf]  ;;  %v3646_v0 = vld [vmem:[#allocation4 + $0x618] sm:$0xf0] }
 0x11f   : > { %2314 = vmatpush.bf16.msrb.mxu2 %v3745_v47  ;;  %v4858_v28 = vpop.f32.mrf.mxu2  ;;  %v2051_v46 = vpop.f32.mrf.mxu1  ;;  %v3809_v47 = vor.u32 %v4286_v35, %v3806_v36  ;;  %v3537_v56 = vor.u32 %v4218_v45, %v3534_v49  ;;  %v4332_v17 = vld [vmem:[#allocation7 + $0xb8] sm:$0xff]  ;;  %v4319_v35 = vld [vmem:[#allocation7 + $0x50] sm:$0xff]  ;;  %v4310_v39 = vld [vmem:[#allocation7 + $0x8] sm:$0xff] }
 0x120   : > { %2327 = vmatpush.bf16.msrb.mxu3 %v3873_v52  ;;  %v4282_v52 = vld [vmem:[#allocation4 + $0x72c] sm:$0xf]  ;;  %v4309_v46 = vld [vmem:[#allocation7] sm:$0xff] }
 0x121   : > { %v3793_v62 = vor.u32 %v4282_v52, %v3790_v53  ;;  %v4317_v49 = vld [vmem:[#allocation7 + $0x40] sm:$0xff] }
 0x122   : > { %2289 = vmatpush.bf16.msrb.mxu0 %v3473_v58  ;;  %2302 = vmatpush.bf16.msrb.mxu1 %v3601_v59  ;;  %v4182_v58 = vld [vmem:[#allocation4 + $0x40c] sm:$0xf]  ;;  %v3390_v59 = vld [vmem:[#allocation4 + $0x418] sm:$0xf0] }
 0x123   : > { %2315 = vmatpush.bf16.msrb.mxu2 %v3729_v60  ;;  %v4214_v60 = vld [vmem:[#allocation4 + $0x50c] sm:$0xf] }
 0x124   : > { %2328 = vmatpush.bf16.msrb.mxu3 %v3857_v63  ;;  %v4246_v63 = vld [vmem:[#allocation4 + $0x60c] sm:$0xf] }
 0x126   : > { %2290 = vmatpush.bf16.msrb.mxu0 %v3457_v15  ;;  %2303 = vmatpush.bf16.msrb.mxu1 %v3585_v25  ;;  %v2077_v1 = vpop.f32.mrf.mxu3  ;;  %v3393_v15 = vor.u32 %v4182_v58, %v3390_v59  ;;  %v3521_v25 = vor.u32 %v4214_v60, %v3518_v8  ;;  %v4325_v60 = vld [vmem:[#allocation7 + $0x80] sm:$0xff] }
 0x127   : > { %2316 = vmatpush.bf16.msrb.mxu2 %v3713_v5  ;;  %v2064_v61 = vpop.f32.mrf.mxu2  ;;  %v3649_v5 = vor.u32 %v4246_v63, %v3646_v0 }
 0x128   : > { %2329 = vmatpush.bf16.msrb.mxu3 %v3841_v14  ;;  %v2050_v14 = vadd.f32 %v4856_v13, %v2037_v9  ;;  %v4314_v13 = vld [vmem:[#allocation7 + $0x28] sm:$0xff] }
 0x12a   : > { %2291 = vmatpush.bf16.msrb.mxu0 %v3441_v21  ;;  %2304 = vmatpush.bf16.msrb.mxu1 %v3569_v22  ;;  %v2063_v18 = vadd.f32 %v4858_v28, %v2050_v14  ;;  %v4313_v21 = vld [vmem:[#allocation7 + $0x20] sm:$0xff] }
 0x12b   : > { %2317 = vmatpush.bf16.msrb.mxu2 %v3697_v23 }
 0x12c   : > { %2330 = vmatpush.bf16.msrb.mxu3 %v3825_v29  ;;  %v2076_v19 = vadd.f32 %v4860_v33, %v2063_v18  ;;  %v4330_v29 = vld [vmem:[#allocation7 + $0xa8] sm:$0xff]  ;;  %v4329_v33 = vld [vmem:[#allocation7 + $0xa0] sm:$0xff] }
 0x12e   : > { %2292 = vmatpush.bf16.msrb.mxu0 %v3425_v7  ;;  %2305 = vmatpush.bf16.msrb.mxu1 %v3553_v41  ;;  %v4328_v41 = vld [vmem:[#allocation7 + $0x98] sm:$0xff] }
 0x12f   : > { %2318 = vmatpush.bf16.msrb.mxu2 %v3681_v42  ;;  %v4318_v42 = vld [vmem:[#allocation7 + $0x48] sm:$0xff] }
 0x130   : > { %2331 = vmatpush.bf16.msrb.mxu3 %v3809_v47  ;;  %v2339_v47 = vmax.f32 %v4848_v48, 0.0  ;;  %v637_v48 = vperm.slane %v4838_v6, 2 }
 0x132   : > { %2293 = vmatpush.bf16.msrb.mxu0 %v3409_v55  ;;  %2306 = vmatpush.bf16.msrb.mxu1 %v3537_v56  ;;  %v2343_v51 = vpack.c.bf16 %v2339_v47, %v2339_v47 }
 0x133   : > { %2319 = vmatpush.bf16.msrb.mxu2 %v3665_v57  ;;  %v4326_v57 = vld [vmem:[#allocation7 + $0x88] sm:$0xff] }
 0x134   : > { %2332 = vmatpush.bf16.msrb.mxu3 %v3793_v62 }
 0x136   : > { %2294 = vmatpush.bf16.msrb.mxu0 %v3393_v15  ;;  %2307 = vmatpush.bf16.msrb.mxu1 %v3521_v25  ;;  %v2088_v22 = vpop.f32.mrf.mxu0  ;;  %v2101_v24 = vpop.f32.mrf.mxu1 }
 0x137   : > { %2320 = vmatpush.bf16.msrb.mxu2 %v3649_v5  ;;  %v2089_v23 = vadd.f32 %v2088_v22, %v2076_v19  ;;  %v4336_v22 = vld [vmem:[#allocation7 + $0xd8] sm:$0xff] }
 0x138   : > { %2333 = vmatpush.bf16.msrb.mxu3 %v3777_v10 }
 0x139   : > { %2295 = vmatmul.bf16.vlgmr.msrb.gmra.mxu0 %v4816_v37  ;;  %2308 = vmatmul.bf16.vlgmr.msrb.gmra.mxu1 %v4820_v40  ;;  %v4321_v37 = vld [vmem:[#allocation7 + $0x60] sm:$0xff]  ;;  %v2102_v40 = vadd.f32 %v2101_v24, %v2089_v23 }
 0x13a   : > { %2607 = vmatpush.bf16.msra.mxu0 %v4316_v11  ;;  %2620 = vmatpush.bf16.msra.mxu1 %v4324_v12  ;;  %v4340_v11 = vld [vmem:[#allocation7 + $0xf8] sm:$0xff] }
 0x13b   : > { %2321 = vmatmul.bf16.vlgmr.msrb.gmra.mxu2 %v4814_v34  ;;  %2334 = vmatmul.bf16.vlgmr.msrb.gmra.mxu3 %v4818_v38  ;;  %v4312_v34 = vld [vmem:[#allocation7 + $0x18] sm:$0xff] }
 0x13c   : > { %2633 = vmatpush.bf16.msra.mxu2 %v4332_v17  ;;  %v4320_v38 = vld [vmem:[#allocation7 + $0x58] sm:$0xff]  ;;  %2646 = vmatpush.bf16.msra.mxu3 %v4340_v11 }
 0x13e   : > { %2608 = vmatpush.bf16.msra.mxu0 %v4315_v16  ;;  %2621 = vmatpush.bf16.msra.mxu1 %v4323_v4  ;;  %v2127_v28 = vpop.f32.mrf.mxu3  ;;  %v2090_v32 = vpop.f32.mrf.mxu0  ;;  %v4339_v16 = vld [vmem:[#allocation7 + $0xf0] sm:$0xff] }
 0x13f   : > { %v2114_v27 = vpop.f32.mrf.mxu2  ;;  %v2103_v36 = vpop.f32.mrf.mxu1 }
 0x140   : > { %2634 = vmatpush.bf16.msra.mxu2 %v4331_v26  ;;  %v2115_v31 = vadd.f32 %v2114_v27, %v2102_v40  ;;  %2647 = vmatpush.bf16.msra.mxu3 %v4339_v16  ;;  %v4334_v26 = vld [vmem:[#allocation7 + $0xc8] sm:$0xff]  ;;  %v4333_v27 = vld [vmem:[#allocation7 + $0xc0] sm:$0xff] }
 0x142   : > { %2609 = vmatpush.bf16.msra.mxu0 %v4314_v13  ;;  %2622 = vmatpush.bf16.msra.mxu1 %v4322_v20  ;;  %v2128_v7 = vadd.f32 %v2127_v28, %v2115_v31  ;;  %v4338_v13 = vld [vmem:[#allocation7 + $0xe8] sm:$0xff] }
 0x144   : > { %2635 = vmatpush.bf16.msra.mxu2 %v4330_v29  ;;  %v2340_v45 = vmax.f32 %v2128_v7, 0.0  ;;  %2648 = vmatpush.bf16.msra.mxu3 %v4338_v13  ;;  %v638_v29 = vperm.slane %v4838_v6, 3 }
 0x146   : > { %2610 = vmatpush.bf16.msra.mxu0 %v4313_v21  ;;  %2623 = vmatpush.bf16.msra.mxu1 %v4321_v37  ;;  %v2129_v44 = vpop.f32.mrf.mxu3  ;;  %v2344_v50 = vpack.c.bf16 %v2340_v45, %v2340_v45  ;;  %v4337_v21 = vld [vmem:[#allocation7 + $0xe0] sm:$0xff]  ;;  %v4335_v37 = vld [vmem:[#allocation7 + $0xd0] sm:$0xff] }
 0x147   : > { %v2116_v43 = vpop.f32.mrf.mxu2 }
 0x148   : > { %2636 = vmatpush.bf16.msra.mxu2 %v4329_v33  ;;  %2649 = vmatpush.bf16.msra.mxu3 %v4337_v21 }
 0x14a   : > { %2611 = vmatpush.bf16.msra.mxu0 %v4312_v34  ;;  %2624 = vmatpush.bf16.msra.mxu1 %v4320_v38 }
 0x14c   : > { %2637 = vmatpush.bf16.msra.mxu2 %v4328_v41  ;;  %2650 = vmatpush.bf16.msra.mxu3 %v4336_v22 }
 0x14e   : > { %2612 = vmatpush.bf16.msra.mxu0 %v4311_v30  ;;  %2625 = vmatpush.bf16.msra.mxu1 %v4319_v35 }
 0x150   : > { %2638 = vmatpush.bf16.msra.mxu2 %v4327_v54  ;;  %2651 = vmatpush.bf16.msra.mxu3 %v4335_v37 }
 0x152   : > { %2613 = vmatpush.bf16.msra.mxu0 %v4310_v39  ;;  %2626 = vmatpush.bf16.msra.mxu1 %v4318_v42 }
 0x154   : > { %2639 = vmatpush.bf16.msra.mxu2 %v4326_v57  ;;  %2652 = vmatpush.bf16.msra.mxu3 %v4334_v26 }
 0x156   : > { %2614 = vmatpush.bf16.msra.mxu0 %v4309_v46  ;;  %2627 = vmatpush.bf16.msra.mxu1 %v4317_v49  ;;  %v2140_v52 = vpop.f32.mrf.mxu0  ;;  %v2153_v53 = vpop.f32.mrf.mxu1 }
 0x157   : > { %v2141_v8 = vadd.f32 %v2140_v52, %v637_v48  ;;  %v4347_v48 = vld [vmem:[#allocation9 + $0x30] sm:$0xff] }
 0x158   : > { %2640 = vmatpush.bf16.msra.mxu2 %v4325_v60  ;;  %2653 = vmatpush.bf16.msra.mxu3 %v4333_v27  ;;  %v4348_v60 = vld [vmem:[#allocation9 + $0x38] sm:$0xff] }
 0x159   : > { %2615 = vmatmul.bf16.vlgmr.msra.gmra.mxu0 %v2343_v51  ;;  %2628 = vmatmul.bf16.vlgmr.msra.gmra.mxu1 %v2344_v50  ;;  %v2154_v63 = vadd.f32 %v2153_v53, %v2141_v8  ;;  %v4433_v53 = vld [vmem:[%s4902_s4] ss:$0 sm:$0xff] }
 0x15a   : > { %2725 = vmatpush.bf16.msrb.mxu0 %v4348_v60  ;;  %v4344_v8 = vld [vmem:[#allocation9 + $0x18] sm:$0xff] }
 0x15e   : > { %v2179_v56 = vpop.f32.mrf.mxu3  ;;  %v2142_v58 = vpop.f32.mrf.mxu0  ;;  %2726 = vmatpush.bf16.msrb.mxu0 %v4347_v48 }
 0x15f   : > { %v2166_v55 = vpop.f32.mrf.mxu2  ;;  %v2155_v59 = vpop.f32.mrf.mxu1 }
 0x160   : > { %v2167_v0 = vadd.f32 %v2166_v55, %v2154_v63  ;;  %v4343_v63 = vld [vmem:[#allocation9 + $0x10] sm:$0xff] }
 0x162   : > { %v2180_v1 = vadd.f32 %v2179_v56, %v2167_v0 }
 0x166   : > { %v2181_v62 = vpop.f32.mrf.mxu3 }
 0x167   : > { %v2168_v61 = vpop.f32.mrf.mxu2  ;;  %v4345_v62 = vld [vmem:[#allocation9 + $0x20] sm:$0xff] }
 0x168   : > { %v4346_v61 = vld [vmem:[#allocation9 + $0x28] sm:$0xff] }
 0x169   : > { %2727 = vmatpush.bf16.msrb.mxu0 %v4346_v61 }
 0x16d   : > { %2728 = vmatpush.bf16.msrb.mxu0 %v4345_v62 }
 0x171   : > { %2729 = vmatpush.bf16.msrb.mxu0 %v4344_v8 }
 0x175   : > { %2730 = vmatpush.bf16.msrb.mxu0 %v4343_v63 }
 0x176   : > { %v2192_v2 = vpop.f32.mrf.mxu0  ;;  %v2205_v9 = vpop.f32.mrf.mxu1 }
 0x177   : > { %v2193_v3 = vadd.f32 %v2192_v2, %v2180_v1  ;;  %v4342_v2 = vld [vmem:[#allocation9 + $0x8] sm:$0xff] }
 0x179   : > { %v2206_v15 = vadd.f32 %v2205_v9, %v2193_v3  ;;  %2731 = vmatpush.bf16.msrb.mxu0 %v4342_v2  ;;  %v4341_v3 = vld [vmem:[#allocation9] sm:$0xff] }
 0x17d   : > { %2732 = vmatpush.bf16.msrb.mxu0 %v4341_v3 }
 0x17e   : > { %v2231_v10 = vpop.f32.mrf.mxu3  ;;  %v2194_v14 = vpop.f32.mrf.mxu0 }
 0x17f   : > { %v2218_v25 = vpop.f32.mrf.mxu2  ;;  %v2207_v17 = vpop.f32.mrf.mxu1 }
 0x180   : > { %v2219_v5 = vadd.f32 %v2218_v25, %v2206_v15 }
 0x182   : > { %v2232_v12 = vadd.f32 %v2231_v10, %v2219_v5 }
 0x184   : > { %v2341_v4 = vmax.f32 %v2232_v12, 0.0  ;;  %v4434_v12 = vld [vmem:[%s4904_s6] ss:$0 sm:$0xff] }
 0x186   : > { %v2345_v18 = vpack.c.bf16 %v2341_v4, %v2341_v4  ;;  %v2233_v20 = vpop.f32.mrf.mxu3 }
 0x187   : > { %v2220_v19 = vpop.f32.mrf.mxu2 }
 0x188   : > { %2641 = vmatmul.bf16.vlgmr.msra.gmra.mxu2 %v2345_v18 }
 0x196   : > { %v2244_v23 = vpop.f32.mrf.mxu0  ;;  %v2257_v24 = vpop.f32.mrf.mxu1 }
 0x197   : > { %v2245_v32 = vadd.f32 %v2244_v23, %v638_v29 }
 0x199   : > { %v2258_v33 = vadd.f32 %v2257_v24, %v2245_v32 }
 0x19e   : > { %v2283_v40 = vpop.f32.mrf.mxu3  ;;  %v2246_v38 = vpop.f32.mrf.mxu0 }
 0x19f   : > { %v2270_v34 = vpop.f32.mrf.mxu2  ;;  %v2259_v28 = vpop.f32.mrf.mxu1 }
 0x1a0   : > { %v2271_v35 = vadd.f32 %v2270_v34, %v2258_v33 }
 0x1a2   : > { %v2284_v36 = vadd.f32 %v2283_v40, %v2271_v35 }
 0x1a6   : > { %v2285_v31 = vpop.f32.mrf.mxu3 }
 0x1a7   : > { %v2272_v30 = vpop.f32.mrf.mxu2 }
 0x1b6   : > { %v2296_v7 = vpop.f32.mrf.mxu0  ;;  %v2309_v39 = vpop.f32.mrf.mxu1 }
 0x1b7   : > { %v2297_v41 = vadd.f32 %v2296_v7, %v2284_v36 }
 0x1b9   : > { %v2310_v42 = vadd.f32 %v2309_v39, %v2297_v41 }
 0x1be   : > { %v2322_v43 = vpop.f32.mrf.mxu2  ;;  %v2335_v45 = vpop.f32.mrf.mxu3 }
 0x1bf   : > { %v2323_v44 = vadd.f32 %v2322_v43, %v2310_v42  ;;  %v2298_v46 = vpop.f32.mrf.mxu0  ;;  %v2311_v47 = vpop.f32.mrf.mxu1 }
 0x1c1   : > { %v2336_v49 = vadd.f32 %v2335_v45, %v2323_v44 }
 0x1c3   : > { %v2342_v50 = vmax.f32 %v2336_v49, 0.0 }
 0x1c5   : > { %v2346_v51 = vpack.c.bf16 %v2342_v50, %v2342_v50 }
 0x1c6   : > { %v2324_v52 = vpop.f32.mrf.mxu2  ;;  %v2337_v6 = vpop.f32.mrf.mxu3 }
 0x1c7   : > { %2654 = vmatmul.bf16.vlgmr.msra.gmra.mxu3 %v2346_v51 }
 0x1d6   : > { %v2616_v54 = vpop.f32.mrf.mxu0  ;;  %v2629_v56 = vpop.f32.mrf.mxu1 }
 0x1d7   : > { %v2617_v55 = vadd.f32 %v4433_v53, %v2616_v54 }
 0x1d9   : > { %v2630_v57 = vadd.f32 %v2629_v56, %v2617_v55 }
 0x1de   : > { %v2618_v58 = vpop.f32.mrf.mxu0  ;;  %v2631_v59 = vpop.f32.mrf.mxu1 }
 0x20b   : > { %v2642_v0 = vpop.f32.mrf.mxu2 }
 0x20c   : > { %v2643_v9 = vadd.f32 %v2642_v0, %v2630_v57 }
 0x213   : > { %v2644_v1 = vpop.f32.mrf.mxu2 }
 0x24a   : > { %v2655_v15 = vpop.f32.mrf.mxu3 }
 0x24b   : > { %v2656_v25 = vadd.f32 %v2655_v15, %v2643_v9 }
 0x24d   : > { %v2659_v5 = vmax.f32 %v2656_v25, 0.0 }
 0x24f   : > { %v2660_v10 = vpack.c.bf16 %v2659_v5, %v2659_v5 }
 0x251   : > { %2733 = vmatmul.bf16.vlgmr.msrb.gmra.mxu0 %v2660_v10 }
 0x252   : > { %v2657_v11 = vpop.f32.mrf.mxu3 }
 0x2ce   : > { %v2734_v14 = vpop.f32.mrf.mxu0 }
 0x2cf   : > { %v2742_v16 = vadd.f32 %v4434_v12, %v2734_v14 }
 0x2d1   : > { %4435 = vtanh.f32 %v2742_v16 }
 0x2d6   : > { %v2736_v17 = vpop.f32.mrf.mxu0 }
 0x2d7   : > { %v4436_v4 = vpop.eup %4435 }
 0x2d8   : > { %2745 = vst.msk [vmem:[%s360_s13] sm:$0xff] %vm2744_vm0, %v4436_v4 }
 0x2d9 PF: > { %p19_p3 = scmp.ge.s32.totalorder %s4738_s16, 4   ;;  %s4910_s24 = smov %s4621_s25 }
 0x2da   : > { %s4911_s25 = smov %s4625_s26  ;;  %s4912_s26 = smov %s4749_s19 }
 0x2db   : > { %s4913_s27 = smov %s4738_s16  ;;  %21 = sbr.rel (!%p19_p3) target bundleno = 5 (0x5), region = 104 }
 0x2e0   :  { %2765 = vsyncpa [#allocation3], 1 }
 0x2e1   :  { %2767 = vsyncpa [#allocation3 + $0x1], 1 }
 0x2e2   :  { %2768 = vsyncpa [#allocation5], 1 }
 0x2e3   :  { %2769 = vsyncpa [#allocation8], 1 }

</bundles_post_ra>
